<compile_context>
chip_gen: v5e
topology: v5e:2x2
jax: 0.10.0
libtpu: 0.0.40
codegen_flags: <defaults>
</compile_context>

<pallas_src>
import functools
import math

import jax
import jax.numpy as jnp
import numpy as np
from jax import lax
from jax.experimental import pallas as pl
from jax.experimental.pallas import tpu as pltpu


def _cdiv(a, b):
    return -(-a // b)


def _sinc_rbf_kernel(d_ref, a_ref, e_ref, o_ref):
    """d_ref: (tr, g)   a_ref/e_ref: (g, L)   o_ref: (tr, L),  L = g*R.

    out[t, j*R + r] = sin(pi*n[r]*d[t,j]) / d[t,j]   ( == pi*n[r]*sinc(n[r]*d[t,j]) )
    with d == 0 clamped to 1e-30 on the narrow slab so sin(tiny)*(1/tiny) reproduces
    pi*n[r] (sinc(0) = 1) without any wide compare/select/broadcast.
    """
    d = d_ref[...]                                          # (tr, g)
    d = jnp.where(d == 0.0, jnp.float32(1e-30), d)          # narrow-slab zero clamp
    inv_d = pl.reciprocal(d, approx=False)                  # narrow-slab reciprocal
    # Lane-dense expansion on the otherwise-idle MXU. HIGHEST keeps the phase (arg)
    # accurate to ~f32; HIGH would leave ~2^-15 relative phase error and break the
    # 2e-5 tolerance for large arguments (review item evaluated and declined).
    arg = jnp.dot(d, a_ref[...], precision=lax.Precision.HIGHEST,
                  preferred_element_type=jnp.float32)       # (tr, L): pi*n[r]*d[t,j]
    inv_rep = jnp.dot(inv_d, e_ref[...], precision=lax.Precision.HIGHEST,
                      preferred_element_type=jnp.float32)   # (tr, L): 1/d replicated
    # TODO(synk): if VALU-bound on v7x, replace the wide sin with the angle-addition
    # recurrence sin(r*x) computed on the narrow (tr, g) slab + the same selection
    # matmul (biggest remaining per-element lever per the review).
    o_ref[...] = (jnp.sin(arg) * inv_rep).astype(o_ref.dtype)


@functools.lru_cache(maxsize=None)
def _build_constants(num_rbf, rbound_upper):
    """Per-(R, rbound) constants, built once with numpy and cached."""
    R = int(num_rbf)
    g = math.lcm(R, 128) // R           # distances folded into one lane-dense row
    L = g * R                           # lane-dense row width (multiple of 128)
    n = np.arange(1, R + 1, dtype=np.float32) / np.float32(rbound_upper)   # (R,)
    pn = (np.pi * n).astype(np.float32)
    group = np.arange(L) // R                                       # lane -> column j
    e = (group[None, :] == np.arange(g)[:, None]).astype(np.float32)  # E[j, j*R+r]=1
    a = e * np.tile(pn, g)[None, :]                                  # A[j, j*R+r]=pi*n[r]
    return R, g, L, jnp.asarray(n[None, :]), jnp.asarray(a), jnp.asarray(e)


def _pick_block_rows(M, g, L, requested, vmem_budget_bytes, target_steps):
    """Lane-dense rows per grid step from a VMEM byte budget (not a row count)."""
    # Per-row bytes: output double-buffer + the (tr, g) f32 d slab, which occupies a
    # full 128-lane tile per row in VMEM regardless of g, double-buffered.
    bytes_per_row = 2 * L * 4 + 2 * 128 * 4
    g_pad = _cdiv(g, 8) * 8
    const_bytes = 2 * 2 * g_pad * L * 4          # A + E, conservatively double-buffered
    avail = max(vmem_budget_bytes - const_bytes, bytes_per_row * 8)
    tr = avail // bytes_per_row
    if requested is not None:
        tr = min(tr, requested)
    tr = min(tr, _cdiv(M, target_steps))         # keep >= target_steps grid steps (v7x)
    tr = max(8, (tr // 8) * 8)                   # second-minor block dim: multiple of 8
    return int(tr), int(bytes_per_row * tr + const_bytes)


def _sinc_forward(d, a, e, *, R, g, L, block_rows, out_dtype,
                  vmem_budget_bytes, target_steps):
    d = jnp.asarray(d, jnp.float32)
    if d.ndim >= 2 and d.shape[-1] == 1:
        d = d[..., 0]                            # (..., 1) -> (...,)
    lead_shape = d.shape
    d = d.reshape(-1)
    N = d.shape[0]

    M = _cdiv(N, g)                              # lane-dense rows needed
    tr, vmem_est = _pick_block_rows(M, g, L, block_rows,
                                    vmem_budget_bytes, target_steps)
    steps = _cdiv(M, tr)
    Mpad = steps * tr
    Npad = Mpad * g
    if Npad != N:
        d = jnp.pad(d, (0, Npad - N))            # padded d=0 rows stay finite (pi*n)
    d2 = d.reshape(Mpad, g)                      # contiguous -> free reshape

    out = pl.pallas_call(
        _sinc_rbf_kernel,
        out_shape=jax.ShapeDtypeStruct((Mpad, L), out_dtype),
        grid_spec=pltpu.PrefetchScalarGridSpec(
            num_scalar_prefetch=0,
            grid=(steps,),
            in_specs=[pl.BlockSpec((tr, g), lambda i: (i, 0)),   # distance slab
                      pl.BlockSpec((g, L), lambda i: (0, 0)),    # A (resident)
                      pl.BlockSpec((g, L), lambda i: (0, 0))],   # E (resident)
            out_specs=pl.BlockSpec((tr, L), lambda i: (i, 0)),
        ),
        compiler_params=pltpu.CompilerParams(
            dimension_semantics=("parallel",),
            vmem_limit_bytes=int(min(max(vmem_est + (4 << 20), 16 << 20), 32 << 20)),
        ),
    )(d2, a, e)

    # (Mpad, g*R) row-major is bit-identical to (Mpad*g, R): free reshape.
    out = out.reshape(Npad, R)
    if Npad != N:
        out = out[:N]
    # TODO(synk): fusing this featurizer into its consumer's tile loop would remove
    # the (N, R) HBM round trip entirely (the real ceiling per the perf review).
    return out.reshape(lead_shape + (R,))


class SincRadialBasis:
    """JAX/Pallas port of the PyTorch SincRadialBasis module (forward pass only)."""

    def __init__(self, seed, num_rbf, rbound_upper, rbf_trainable=False, *,
                 block_rows=None, out_dtype=jnp.float32,
                 vmem_budget_bytes=10 << 20, target_steps=4):
        # `seed` is irrelevant: the torch init is a deterministic arange/rbound.
        # `rbf_trainable` only changes parameter-vs-buffer registration in torch;
        # the forward math is identical, so it is a no-op here.
        del seed, rbf_trainable
        R, g, L, n, a, e = _build_constants(int(num_rbf), float(rbound_upper))
        self.n = n                               # (1, R), same values as torch buffer
        self._a, self._e = a, e
        self._fwd = jax.jit(functools.partial(
            _sinc_forward, R=R, g=g, L=L, block_rows=block_rows,
            out_dtype=out_dtype, vmem_budget_bytes=int(vmem_budget_bytes),
            target_steps=int(target_steps)))

    def __call__(self, norm_pos_difference):
        return self._fwd(norm_pos_difference, self._a, self._e)


if __name__ == "__main__":
    num_rbf = 16
    rbound_upper = 5.0
    N = 2000     # deliberately not a multiple of the fold width -> exercises padding

    key = jax.random.PRNGKey(0)
    d = jax.random.uniform(key, (N, 1), dtype=jnp.float32,
                           minval=0.0, maxval=rbound_upper)
    d = d.at[0, 0].set(0.0)                      # exercise the sinc(0) = 1 branch

    module = SincRadialBasis(seed=0, num_rbf=num_rbf, rbound_upper=rbound_upper)
    out = jax.block_until_ready(module(d))       # sync only in the test harness

    # Pure-JAX reference with the same math as torch: pi * n * sinc(d * n).
    n = module.n                                 # (1, R)
    x = d * n
    ref = math.pi * n * jnp.where(x == 0.0, 1.0,
                                  jnp.sin(math.pi * x) / (math.pi * x))
    assert out.shape == (N, num_rbf), out.shape
    err = float(jnp.max(jnp.abs(out - ref)))
    assert jnp.allclose(out, ref, atol=2e-5, rtol=2e-5), f"max abs err {err}"
    print("KERNEL_OK")
</pallas_src>

<mosaic_0001>
module attributes {stable_mosaic.version = 11 : i64} {
  func.func @_sinc_rbf_kernel(%arg0: i32, %arg1: memref<56x8xf32, #tpu.memory_space<vmem>>, %arg2: memref<8x128xf32, #tpu.memory_space<vmem>>, %arg3: memref<8x128xf32, #tpu.memory_space<vmem>>, %arg4: memref<56x128xf32, #tpu.memory_space<vmem>>) attributes {dimension_semantics = [#tpu.dimension_semantics<parallel>], iteration_bounds = array<i64: 5>, scalar_prefetch = 0 : i64, scratch_operands = 0 : i64, tpu.core_type = #tpu.core_type<tc>, window_params = [{transform_indices = @transform_0, window_bounds = array<i64: 56, 8>}, {pipeline_mode = #tpu.pipeline_mode<synchronous>, transform_indices = @transform_1, window_bounds = array<i64: 8, 128>}, {pipeline_mode = #tpu.pipeline_mode<synchronous>, transform_indices = @transform_2, window_bounds = array<i64: 8, 128>}, {transform_indices = @transform_3, window_bounds = array<i64: 56, 128>}]} {
    %c0 = arith.constant 0 : index
    %c0_0 = arith.constant 0 : index
    %0 = vector.load %arg1[%c0, %c0_0] : memref<56x8xf32, #tpu.memory_space<vmem>>, vector<56x8xf32>
    %cst = arith.constant 0.000000e+00 : f32
    %1 = vector.broadcast %cst : f32 to vector<56x8xf32>
    %2 = arith.cmpf oeq, %0, %1 : vector<56x8xf32>
    %cst_1 = arith.constant 1.000000e-30 : f32
    %3 = vector.broadcast %cst_1 : f32 to vector<56x8xf32>
    %4 = arith.select %2, %3, %0 : vector<56x8xi1>, vector<56x8xf32>
    %5 = tpu.reciprocal %4 : vector<56x8xf32> -> vector<56x8xf32>
    %c0_2 = arith.constant 0 : index
    %c0_3 = arith.constant 0 : index
    %6 = vector.load %arg2[%c0_2, %c0_3] : memref<8x128xf32, #tpu.memory_space<vmem>>, vector<8x128xf32>
    %cst_4 = arith.constant dense<0.000000e+00> : vector<56x128xf32>
    %7 = tpu.matmul %4, %6, %cst_4 {dimension_numbers = #tpu.dot_dimension_numbers<[1], [0], [0], [1], [0, 0, 1, 1], [], []>, precision = #tpu.contract_precision<fp32>} : vector<56x8xf32>, vector<8x128xf32>, vector<56x128xf32> -> vector<56x128xf32>
    %c0_5 = arith.constant 0 : index
    %c0_6 = arith.constant 0 : index
    %8 = vector.load %arg3[%c0_5, %c0_6] : memref<8x128xf32, #tpu.memory_space<vmem>>, vector<8x128xf32>
    %cst_7 = arith.constant dense<0.000000e+00> : vector<56x128xf32>
    %9 = tpu.matmul %5, %8, %cst_7 {dimension_numbers = #tpu.dot_dimension_numbers<[1], [0], [0], [1], [0, 0, 1, 1], [], []>, precision = #tpu.contract_precision<fp32>} : vector<56x8xf32>, vector<8x128xf32>, vector<56x128xf32> -> vector<56x128xf32>
    %10 = math.sin %7 : vector<56x128xf32>
    %11 = arith.mulf %10, %9 : vector<56x128xf32>
    %c0_8 = arith.constant 0 : index
    %c0_9 = arith.constant 0 : index
    %12 = vector.load %arg4[%c0_8, %c0_9] : memref<56x128xf32, #tpu.memory_space<vmem>>, vector<56x128xf32>
    tpu.vector_store %arg4[%c0_8, %c0_9], %11 {strides = array<i32>} : memref<56x128xf32, #tpu.memory_space<vmem>>, vector<56x128xf32>,
    return
  }
  func.func @transform_0(%arg0: i32) -> (i32, i32) {
    %c0_i32 = arith.constant 0 : i32
    %c0_i32_0 = arith.constant 0 : i32
    return %arg0, %c0_i32 : i32, i32
  }
  func.func @transform_1(%arg0: i32) -> (i32, i32) {
    %c0_i32 = arith.constant 0 : i32
    %c0_i32_0 = arith.constant 0 : i32
    %c0_i32_1 = arith.constant 0 : i32
    return %c0_i32, %c0_i32_0 : i32, i32
  }
  func.func @transform_2(%arg0: i32) -> (i32, i32) {
    %c0_i32 = arith.constant 0 : i32
    %c0_i32_0 = arith.constant 0 : i32
    %c0_i32_1 = arith.constant 0 : i32
    return %c0_i32, %c0_i32_0 : i32, i32
  }
  func.func @transform_3(%arg0: i32) -> (i32, i32) {
    %c0_i32 = arith.constant 0 : i32
    %c0_i32_0 = arith.constant 0 : i32
    return %arg0, %c0_i32 : i32, i32
  }
}

</mosaic_0001>

<bundles_post_ra>
// kernel: _sinc_forward.1
= control target key start
LH: loop header
LB: loop body
LE: loop exit
PB: predicated region body
PF: predicated region fallthrough
CT: control target
= control target key end

     0   :  { %s2251_s12 = smov 0   ;;  %s3762_s0 = inlined_call_operand.vmem [shape: f32[280,8], index: 0, kind: input, shape index: {}]   ;;  %s3763_s1 = inlined_call_operand.vmem [shape: f32[8,128], index: 1, kind: input, shape index: {}]   ;;  %s3764_s2 = inlined_call_operand.vmem [shape: f32[8,128], index: 2, kind: input, shape index: {}]   ;;  %s3765_s3 = inlined_call_operand.vmem [shape: f32[280,128], index: 3, kind: output, shape index: {}]  }
   0x1 LB: > { %s2157_s13 = sadd.s32 4294967295, %s2222_s12   ;;  %p2161_p0 = scmp.ge.s32.totalorder %s2222_s12, 1  ;;  %s2222_s12 = sphi %s2251_s12, %s13_s12  }
   0x2   : > { %p138_p1 = scmp.lt.s32.totalorder %s2222_s12, 6 }
   0x4   : > { %p139_p2 = pnand %p2161_p0, %p138_p1 }
   0x6   : > { %142 = sbr.rel (%p139_p2) target bundleno = 524 (0x20c), region = 32 }
   0xb   : > { %v293_v0 = vld [vmem:[%s3763_s1] sm:$0xff]  ;;  %s162_s16 = smul.u32 7, %s2157_s13  ;;  %vm294_vm0 = vcmask 64512  }
   0xc   : > { %v331_v1 = vand.u32 4294901760, %v293_v0  ;;  %v648_v29 = vld [vmem:[%s3764_s2] sm:$0xff] }
   0xd   : > { %p163_p3 = scmp.lt.s32.totalorder %s162_s16, 34  ;;  %v685_v31 = vand.u32 4294901760, %v648_v29 }
   0xe   : > { %v406_v2 = vsub.f32 %v293_v0, %v331_v1  ;;  %510 = vmatpush.msra.mxu3 %v331_v1  ;;  %332 = vmatpush.msra.mxu0 %v331_v1 }
   0xf   : > { %s3984_s16 = smov (!%p163_p3, %s162_s16), 34  ;;  %v760_v33 = vsub.f32 %v648_v29, %v685_v31 }
  0x10   : > { %457 = vmatpush.msra.mxu2 %v406_v2  ;;  %v407_v3 = vand.u32 4294901760, %v406_v2  ;;  %s2162_s17 = sshll.u32 %s3984_s16, 3 }
  0x11   : > { %s2270_s20 = scalar_lea.vmem %s3762_s0, %s2162_s17  ;;  %v761_v37 = vand.u32 4294901760, %v760_v33  ;;  %s3535_s25 = scalar_lea.vmem %s3765_s3, %s2162_s17 }
  0x12   : > { %v408_v4 = vsub.f32 %v406_v2, %v407_v3  ;;  %572 = vmatpush.msrb.mxu0 %v407_v3  ;;  %v174_v5 = vld [vmem:[%s2270_s20] sm:$0xff]  ;;  %v175_v6 = vld [vmem:[%s2270_s20 + $0x8] sm:$0xff]  ;;  %v176_v7 = vld [vmem:[%s2270_s20 + $0x10] sm:$0xff]  ;;  %686 = vmatpush.msrb.mxu2 %v685_v31 }
  0x13   : > { %vm181_vm1 = vcmp.eq.f32.partialorder %v174_v5, 0.0  ;;  %vm182_vm2 = vcmp.eq.f32.partialorder %v175_v6, 0.0  ;;  %vm183_vm3 = vcmp.eq.f32.partialorder %v176_v7, 0.0  ;;  %v177_v18 = vld [vmem:[%s2270_s20 + $0x18] sm:$0xff]  ;;  %v178_v28 = vld [vmem:[%s2270_s20 + $0x20] sm:$0xff]  ;;  %v762_v40 = vsub.f32 %v760_v33, %v761_v37  ;;  %v179_v43 = vld [vmem:[%s2270_s20 + $0x28] sm:$0xff] }
  0x14   : > { %v409_v8 = vand.u32 4294901760, %v408_v4  ;;  %v2275_v9 = vsel %vm181_vm1, 1e-30, %v174_v5  ;;  %v2277_v10 = vsel %vm182_vm2, 1e-30, %v175_v6  ;;  %vm184_vm4 = vcmp.eq.f32.partialorder %v177_v18, 0.0 }
  0x15   : > { %v296_v11 = vsel %vm294_vm0, %v2275_v9, 0  ;;  %v299_v12 = vsel %vm294_vm0, %v2277_v10, 0  ;;  %v2287_v15 = vsel %vm183_vm3, 1e-30, %v176_v7  ;;  %2202 = vrcp.f32 %v2275_v9  ;;  %v180_v56 = vld [vmem:[%s2270_s20 + $0x30] sm:$0xff] }
  0x16   : > { %410 = vmatpush.msra.mxu1 %v409_v8  ;;  %v2283_v13 = vand.u32 4294901760, %v296_v11  ;;  %v2285_v14 = vand.u32 4294901760, %v299_v12  ;;  %v302_v19 = vsel %vm294_vm0, %v2287_v15, 0  ;;  %v2298_v25 = vsel %vm184_vm4, 1e-30, %v177_v18 }
  0x17   : > { %v2296_v23 = vand.u32 4294901760, %v302_v19  ;;  %v305_v30 = vsel %vm294_vm0, %v2298_v25, 0  ;;  %vm185_vm5 = vcmp.eq.f32.partialorder %v178_v28, 0.0  ;;  %2204 = vrcp.f32 %v2277_v10 }
  0x18   : > { %618 = vmatpush.msrb.mxu1 %v331_v1  ;;  %v334_v16 = vsub.f32 %v296_v11, %v2283_v13  ;;  %v342_v17 = vsub.f32 %v299_v12, %v2285_v14  ;;  %v2311_v36 = vand.u32 4294901760, %v305_v30  ;;  %v2315_v39 = vsel %vm185_vm5, 1e-30, %v178_v28 }
  0x19   : > { %412 = vmatmul.f32.vlgmr.msra.gmra.mxu1 %v2283_v13  ;;  %v350_v27 = vsub.f32 %v302_v19, %v2296_v23  ;;  %v308_v44 = vsel %vm294_vm0, %v2315_v39, 0  ;;  %v763_v45 = vand.u32 4294901760, %v762_v40  ;;  %vm186_vm6 = vcmp.eq.f32.partialorder %v179_v43, 0.0 }
  0x1a   : > { %460 = vmatmul.f32.vlgmr.msra.gmra.mxu2 %v334_v16  ;;  %v335_v20 = vand.u32 4294901760, %v334_v16  ;;  %v343_v22 = vand.u32 4294901760, %v342_v17  ;;  %864 = vmatpush.msra.mxu1 %v685_v31  ;;  %v358_v42 = vsub.f32 %v305_v30, %v2311_v36  ;;  %2206 = vrcp.f32 %v2287_v15 }
  0x1b   : > { %v2308_v32 = vpop.eup %2202  ;;  %v351_v35 = vand.u32 4294901760, %v350_v27  ;;  %926 = vmatpush.msra.mxu2 %v761_v37  ;;  %764 = vmatpush.msrb.mxu3 %v763_v45  ;;  %v2325_v50 = vand.u32 4294901760, %v308_v44  ;;  %v2330_v53 = vsel %vm186_vm6, 1e-30, %v179_v43  ;;  %vm200_vm7 = vweird.f32 %v2275_v9 }
  0x1c   : > { %514 = vmatmul.f32.vlgmr.msra.gmra.mxu3 %v335_v20  ;;  %v336_v21 = vsub.f32 %v334_v16, %v335_v20  ;;  %v344_v26 = vsub.f32 %v342_v17, %v343_v22  ;;  %v196_v38 = vmul.f32 %v2308_v32, %v2275_v9  ;;  %v359_v49 = vand.u32 4294901760, %v358_v42 }
  0x1d   : > { %v352_v41 = vsub.f32 %v350_v27, %v351_v35  ;;  %v2322_v47 = vpop.eup %2204  ;;  %972 = vmatpush.msra.mxu3 %v685_v31  ;;  %vm201_vm8 = vweird.f32 %v2308_v32  ;;  %v366_v55 = vsub.f32 %v308_v44, %v2325_v50  ;;  %v206_v57 = vand.u32 2147483648, %v2275_v9 }
  0x1e   : > { %v337_v24 = vand.u32 4294901760, %v336_v21  ;;  %v345_v34 = vand.u32 4294901760, %v344_v26  ;;  %v197_v46 = vsub.f32 1.0, %v196_v38  ;;  %v210_v52 = vmul.f32 %v2322_v47, %v2277_v10  ;;  %vm2344_vm9 = vmor %vm200_vm7, %vm201_vm8 }
  0x1f   : > { %v353_v48 = vand.u32 4294901760, %v352_v41  ;;  %v360_v54 = vsub.f32 %v358_v42, %v359_v49  ;;  %v311_v58 = vsel %vm294_vm0, %v2330_v53, 0  ;;  %v204_v60 = vand.u32 2147483647, %v2275_v9 }
  0x20   : > { %338 = vmatmul.f32.vlgmr.msra.gmra.mxu0 %v337_v24  ;;  %v198_v51 = vmul.f32 %v2308_v32, %v197_v46  ;;  %v211_v61 = vsub.f32 1.0, %v210_v52  ;;  %v2342_v62 = vpop.eup %2206  ;;  %2208 = vrcp.f32 %v2298_v25  ;;  %vm187_vm10 = vcmp.eq.f32.partialorder %v180_v56, 0.0 }
  0x21   : > { %416 = vmatmul.f32.gmra.mxu1 %v2285_v14  ;;  %811 = vmatpush.msra.mxu0 %v760_v33  ;;  %v361_v0 = vand.u32 4294901760, %v360_v54  ;;  %v367_v1 = vand.u32 4294901760, %v366_v55  ;;  %v2349_v2 = vand.u32 4294901760, %v311_v58  ;;  %v207_v3 = vor.u32 1.1754944e-38, %v206_v57 }
  0x22   : > { %465 = vmatmul.f32.gmra.mxu2 %v342_v17  ;;  %v199_v59 = vadd.f32 %v2308_v32, %v198_v51  ;;  %vm205_vm11 = vcmp.eq.f32.partialorder %v204_v60, 8.507059e+37  ;;  %v212_v5 = vmul.f32 %v2322_v47, %v211_v61  ;;  %v224_v6 = vmul.f32 %v2342_v62, %v2287_v15 }
  0x23   : > { %v2357_v7 = vsel %vm187_vm10, 1e-30, %v180_v56  ;;  %vm214_vm12 = vweird.f32 %v2277_v10  ;;  %vm215_vm13 = vweird.f32 %v2322_v47  ;;  %v368_v8 = vsub.f32 %v366_v55, %v367_v1 }
  0x24   : > { %520 = vmatmul.f32.gmra.mxu3 %v343_v22  ;;  %v203_v4 = vsel %vm2344_vm9, %v2308_v32, %v199_v59  ;;  %v374_v9 = vsub.f32 %v311_v58, %v2349_v2  ;;  %v220_v12 = vand.u32 2147483648, %v2277_v10  ;;  %v314_v17 = vsel %vm294_vm0, %v2357_v7, 0  ;;  %vm2370_vm14 = vmor %vm214_vm12, %vm215_vm13 }
  0x25   : > { %v208_v11 = vsel %vm205_vm11, %v207_v3, %v203_v4  ;;  %v213_v18 = vadd.f32 %v2322_v47, %v212_v5  ;;  %v218_v19 = vand.u32 2147483647, %v2277_v10  ;;  %v225_v20 = vsub.f32 1.0, %v224_v6 }
  0x26   : > { %v2364_v16 = vpop.eup %2208  ;;  %2210 = vrcp.f32 %v2315_v39  ;;  %v650_v22 = vsel %vm294_vm0, %v208_v11, 0  ;;  %v369_v24 = vand.u32 4294901760, %v368_v8  ;;  %v375_v26 = vand.u32 4294901760, %v374_v9 }
  0x27   : > { %v221_v28 = vor.u32 1.1754944e-38, %v220_v12  ;;  %v217_v10 = vsel %vm2370_vm14, %v2322_v47, %v213_v18  ;;  %vm219_vm15 = vcmp.eq.f32.partialorder %v218_v19, 8.507059e+37  ;;  %v226_v29 = vmul.f32 %v2342_v62, %v225_v20 }
  0x28   : > { %346 = vmatmul.f32.gmra.mxu0 %v345_v34  ;;  %v238_v30 = vmul.f32 %v2364_v16, %v2298_v25  ;;  %v2384_v31 = vand.u32 4294901760, %v650_v22  ;;  %vm228_vm1 = vweird.f32 %v2287_v15  ;;  %vm229_vm2 = vweird.f32 %v2342_v62 }
  0x29   : > { %420 = vmatmul.f32.gmra.mxu1 %v2296_v23  ;;  %v376_v32 = vsub.f32 %v374_v9, %v375_v26  ;;  %v222_v34 = vsel %vm219_vm15, %v221_v28, %v217_v10  ;;  %v227_v38 = vadd.f32 %v2342_v62, %v226_v29  ;;  %v232_v40 = vand.u32 2147483647, %v2287_v15  ;;  %vm2398_vm3 = vmor %vm228_vm1, %vm229_vm2 }
  0x2a   : > { %470 = vmatmul.f32.gmra.mxu2 %v350_v27  ;;  %v2376_v27 = vand.u32 4294901760, %v314_v17  ;;  %v239_v41 = vsub.f32 1.0, %v238_v30  ;;  %v653_v44 = vsel %vm294_vm0, %v222_v34, 0  ;;  %2212 = vrcp.f32 %v2330_v53 }
  0x2b   : > { %v377_v45 = vand.u32 4294901760, %v376_v32  ;;  %vm233_vm4 = vcmp.eq.f32.partialorder %v232_v40, 8.507059e+37  ;;  %v2411_v52 = vand.u32 4294901760, %v653_v44  ;;  %vm242_vm5 = vweird.f32 %v2298_v25 }
  0x2c   : > { %526 = vmatmul.f32.gmra.mxu3 %v351_v35  ;;  %v382_v33 = vsub.f32 %v314_v17, %v2376_v27  ;;  %v234_v35 = vand.u32 2147483648, %v2287_v15  ;;  %v2391_v37 = vpop.eup %2210  ;;  %v231_v15 = vsel %vm2398_vm3, %v2342_v62, %v227_v38  ;;  %vm243_vm6 = vweird.f32 %v2364_v16 }
  0x2d   : > { %v248_v56 = vand.u32 2147483648, %v2298_v25  ;;  %v246_v58 = vand.u32 2147483647, %v2298_v25  ;;  %v2425_v62 = vsub.f32 %v653_v44, %v2411_v52  ;;  %vm2427_vm7 = vmor %vm242_vm5, %vm243_vm6  ;;  %2214 = vrcp.f32 %v2357_v7 }
  0x2e   : > { %v383_v46 = vand.u32 4294901760, %v382_v33  ;;  %v235_v47 = vor.u32 1.1754944e-38, %v234_v35  ;;  %vm256_vm9 = vweird.f32 %v2315_v39  ;;  %vm257_vm10 = vweird.f32 %v2391_v37 }
  0x2f   : > { %vm247_vm8 = vcmp.eq.f32.partialorder %v246_v58, 8.507059e+37  ;;  %v697_v8 = vand.u32 4294901760, %v2425_v62  ;;  %v262_v12 = vand.u32 2147483648, %v2315_v39  ;;  %v260_v17 = vand.u32 2147483647, %v2315_v39  ;;  %vm2454_vm11 = vmor %vm256_vm9, %vm257_vm10 }
  0x30   : > { %354 = vmatmul.f32.gmra.mxu0 %v353_v48  ;;  %v240_v48 = vmul.f32 %v2364_v16, %v239_v41  ;;  %v384_v54 = vsub.f32 %v382_v33, %v383_v46  ;;  %v2419_v60 = vpop.eup %2212  ;;  %vm270_vm13 = vweird.f32 %v2330_v53  ;;  %v276_v34 = vand.u32 2147483648, %v2330_v53 }
  0x31   : > { %424 = vmatmul.f32.gmra.mxu1 %v2311_v36  ;;  %v266_v5 = vmul.f32 %v2419_v60, %v2330_v53  ;;  %v698_v20 = vsub.f32 %v2425_v62, %v697_v8  ;;  %vm261_vm12 = vcmp.eq.f32.partialorder %v260_v17, 8.507059e+37  ;;  %vm271_vm14 = vweird.f32 %v2419_v60 }
  0x32   : > { %475 = vmatmul.f32.gmra.mxu2 %v358_v42  ;;  %v2396_v42 = vsub.f32 %v650_v22, %v2384_v31  ;;  %v241_v57 = vadd.f32 %v2364_v16, %v240_v48  ;;  %v385_v25 = vand.u32 4294901760, %v384_v54  ;;  %vm272_vm15 = vmor %vm270_vm13, %vm271_vm14  ;;  %v277_v43 = vor.u32 1.1754944e-38, %v276_v34 }
  0x33   : > { %v267_v18 = vsub.f32 1.0, %v266_v5  ;;  %v2215_v19 = vpop.eup %2214  ;;  %v699_v29 = vand.u32 4294901760, %v698_v20  ;;  %vm284_vm2 = vweird.f32 %v2357_v7  ;;  %v290_v48 = vand.u32 2147483648, %v2357_v7 }
  0x34   : > { %532 = vmatmul.f32.gmra.mxu3 %v359_v49  ;;  %v252_v49 = vmul.f32 %v2391_v37, %v2315_v39  ;;  %v689_v51 = vand.u32 4294901760, %v2396_v42  ;;  %v245_v3 = vsel %vm2427_vm7, %v2364_v16, %v241_v57  ;;  %v280_v10 = vmul.f32 %v2215_v19, %v2357_v7 }
  0x35   : > { %v268_v28 = vmul.f32 %v2419_v60, %v267_v18  ;;  %vm285_vm3 = vweird.f32 %v2215_v19  ;;  %v288_v54 = vand.u32 2147483647, %v2357_v7 }
  0x36   : > { %v253_v59 = vsub.f32 1.0, %v252_v49  ;;  %v690_v61 = vsub.f32 %v2396_v42, %v689_v51  ;;  %v281_v38 = vsub.f32 1.0, %v280_v10 }
  0x37   : > { %v269_v35 = vadd.f32 %v2419_v60, %v268_v28  ;;  %vm289_vm5 = vcmp.eq.f32.partialorder %v288_v54, 8.507059e+37 }
  0x38   : > { %362 = vmatmul.f32.gmra.mxu0 %v361_v0  ;;  %v254_v4 = vmul.f32 %v2391_v37, %v253_v59  ;;  %v691_v6 = vand.u32 4294901760, %v690_v61 }
  0x39   : > { %428 = vmatmul.f32.gmra.mxu1 %v2325_v50  ;;  %v273_v44 = vsel %vm272_vm15, %v2419_v60, %v269_v35 }
  0x3a   : > { %480 = vmatmul.f32.gmra.mxu2 %v366_v55  ;;  %v236_v55 = vsel %vm233_vm4, %v235_v47, %v231_v15  ;;  %v255_v16 = vadd.f32 %v2391_v37, %v254_v4  ;;  %vm286_vm4 = vmor %vm284_vm2, %vm285_vm3 }
  0x3b   : > { %v656_v0 = vsel %vm294_vm0, %v236_v55, 0 }
  0x3c   : > { %538 = vmatmul.f32.gmra.mxu3 %v367_v1  ;;  %v249_v1 = vor.u32 1.1754944e-38, %v248_v56  ;;  %v259_v39 = vsel %vm2454_vm11, %v2391_v37, %v255_v16  ;;  %v274_v37 = vand.u32 2147483647, %v2330_v53 }
  0x3e   : > { %v250_v11 = vsel %vm247_vm8, %v249_v1, %v245_v3  ;;  %vm275_vm1 = vcmp.eq.f32.partialorder %v274_v37, 8.507059e+37 }
  0x3f   : > { %v278_v15 = vsel %vm275_vm1, %v277_v43, %v273_v44 }
  0x40   : > { %370 = vmatmul.f32.gmra.mxu0 %v369_v24  ;;  %v659_v24 = vsel %vm294_vm0, %v250_v11, 0  ;;  %v665_v57 = vsel %vm294_vm0, %v278_v15, 0 }
  0x41   : > { %432 = vmatmul.f32.gmra.mxu1 %v2349_v2  ;;  %v2466_v32 = vand.u32 4294901760, %v659_v24  ;;  %v2501_v7 = vand.u32 4294901760, %v665_v57 }
  0x42   : > { %485 = vmatmul.f32.gmra.mxu2 %v374_v9  ;;  %v2440_v9 = vand.u32 4294901760, %v656_v0 }
  0x43   : > { %v2479_v41 = vsub.f32 %v659_v24, %v2466_v32 }
  0x44   : > { %544 = vmatmul.f32.gmra.mxu3 %v375_v26  ;;  %v2452_v21 = vsub.f32 %v656_v0, %v2440_v9  ;;  %v263_v26 = vor.u32 1.1754944e-38, %v262_v12  ;;  %v2507_v0 = vsub.f32 %v665_v57, %v2501_v7 }
  0x46   : > { %v705_v30 = vand.u32 4294901760, %v2452_v21  ;;  %v729_v3 = vand.u32 4294901760, %v2507_v0 }
  0x48   : > { %378 = vmatmul.f32.gmra.mxu0 %v377_v45  ;;  %v706_v40 = vsub.f32 %v2452_v21, %v705_v30  ;;  %v282_v45 = vmul.f32 %v2215_v19, %v281_v38 }
  0x49   : > { %436 = vmatmul.f32.gmra.mxu1 %v2376_v27 }
  0x4a   : > { %490 = vmatmul.f32.gmra.mxu2 %v382_v33  ;;  %v264_v33 = vsel %vm261_vm12, %v263_v26, %v259_v39  ;;  %v707_v53 = vand.u32 4294901760, %v706_v40  ;;  %v283_v49 = vadd.f32 %v2215_v19, %v282_v45 }
  0x4c   : > { %550 = vmatmul.f32.gmra.mxu3 %v383_v46  ;;  %v713_v46 = vand.u32 4294901760, %v2479_v41  ;;  %v287_v58 = vsel %vm286_vm4, %v2215_v19, %v283_v49 }
  0x4e   : > { %v714_v55 = vsub.f32 %v2479_v41, %v713_v46 }
  0x50   : > { %386 = vmatmul.f32.gmra.mxu0 %v385_v25  ;;  %v715_v59 = vand.u32 4294901760, %v714_v55 }
  0x51   : > { %620 = vmatmul.f32.vlgmr.msrb.gmra.mxu1 %v2283_v13 }
  0x52   : > { %692 = vmatmul.f32.vlgmr.msrb.gmra.mxu2 %v691_v6 }
  0x54   : > { %766 = vmatmul.f32.vlgmr.msrb.gmra.mxu3 %v2384_v31 }
  0x58   : > { %574 = vmatmul.f32.vlgmr.msrb.gmra.mxu0 %v2283_v13  ;;  %v662_v13 = vsel %vm294_vm0, %v264_v33, 0 }
  0x59   : > { %624 = vmatmul.f32.gmra.mxu1 %v2285_v14  ;;  %v2485_v47 = vand.u32 4294901760, %v662_v13 }
  0x5a   : > { %700 = vmatmul.f32.gmra.mxu2 %v699_v29 }
  0x5b   : > { %v2496_v56 = vsub.f32 %v662_v13, %v2485_v47 }
  0x5c   : > { %770 = vmatmul.f32.gmra.mxu3 %v2411_v52 }
  0x5d   : > { %v721_v60 = vand.u32 4294901760, %v2496_v56 }
  0x5f   : > { %v722_v63 = vsub.f32 %v2496_v56, %v721_v60 }
  0x60   : > { %578 = vmatmul.f32.gmra.mxu0 %v2285_v14  ;;  %v291_v14 = vor.u32 1.1754944e-38, %v290_v48 }
  0x61   : > { %628 = vmatmul.f32.gmra.mxu1 %v2296_v23  ;;  %v723_v1 = vand.u32 4294901760, %v722_v63 }
  0x62   : > { %708 = vmatmul.f32.gmra.mxu2 %v707_v53  ;;  %v292_v61 = vsel %vm289_vm5, %v291_v14, %v287_v58 }
  0x63   : > { %v668_v25 = vsel %vm294_vm0, %v292_v61, 0 }
  0x64   : > { %774 = vmatmul.f32.gmra.mxu3 %v2440_v9  ;;  %v2512_v4 = vand.u32 4294901760, %v668_v25 }
  0x66   : > { %v2518_v5 = vsub.f32 %v668_v25, %v2512_v4 }
  0x68   : > { %582 = vmatmul.f32.gmra.mxu0 %v2296_v23  ;;  %v730_v23 = vsub.f32 %v2507_v0, %v729_v3  ;;  %v737_v11 = vand.u32 4294901760, %v2518_v5 }
  0x69   : > { %632 = vmatmul.f32.gmra.mxu1 %v2311_v36 }
  0x6a   : > { %716 = vmatmul.f32.gmra.mxu2 %v715_v59  ;;  %v731_v6 = vand.u32 4294901760, %v730_v23 }
  0x6c   : > { %778 = vmatmul.f32.gmra.mxu3 %v2466_v32 }
  0x70   : > { %586 = vmatmul.f32.gmra.mxu0 %v2311_v36  ;;  %v738_v36 = vsub.f32 %v2518_v5, %v737_v11 }
  0x71   : > { %636 = vmatmul.f32.gmra.mxu1 %v2325_v50 }
  0x72   : > { %724 = vmatmul.f32.gmra.mxu2 %v723_v1  ;;  %v739_v12 = vand.u32 4294901760, %v738_v36 }
  0x74   : > { %782 = vmatmul.f32.gmra.mxu3 %v2485_v47 }
  0x78   : > { %590 = vmatmul.f32.gmra.mxu0 %v2325_v50 }
  0x79   : > { %640 = vmatmul.f32.gmra.mxu1 %v2349_v2 }
  0x7a   : > { %732 = vmatmul.f32.gmra.mxu2 %v731_v6  ;;  %v3772_v6 = vmov 1326507024  }
  0x7c   : > { %786 = vmatmul.f32.gmra.mxu3 %v2501_v7 }
  0x80   : > { %594 = vmatmul.f32.gmra.mxu0 %v2349_v2 }
  0x81   : > { %644 = vmatmul.f32.gmra.mxu1 %v2376_v27 }
  0x82   : > { %740 = vmatmul.f32.gmra.mxu2 %v739_v12 }
  0x84   : > { %790 = vmatmul.f32.gmra.mxu3 %v2512_v4 }
  0x88   : > { %598 = vmatmul.f32.gmra.mxu0 %v2376_v27 }
  0x89   : > { %868 = vmatmul.f32.vlgmr.msra.gmra.mxu1 %v689_v51 }
  0x8a   : > { %928 = vmatmul.f32.vlgmr.msra.gmra.mxu2 %v2384_v31 }
  0x8c   : > { %974 = vmatmul.f32.vlgmr.msra.gmra.mxu3 %v2384_v31 }
  0x90   : > { %814 = vmatmul.f32.vlgmr.msra.gmra.mxu0 %v2396_v42 }
  0x91   : > { %874 = vmatmul.f32.gmra.mxu1 %v697_v8 }
  0x92   : > { %932 = vmatmul.f32.gmra.mxu2 %v2411_v52 }
  0x94   : > { %978 = vmatmul.f32.gmra.mxu3 %v2411_v52 }
  0x96   : > { %v413_v50 = vpop.f32.mrf.mxu1 }
  0x98   : > { %819 = vmatmul.f32.gmra.mxu0 %v2425_v62 }
  0x99   : > { %880 = vmatmul.f32.gmra.mxu1 %v705_v30 }
  0x9a   : > { %936 = vmatmul.f32.gmra.mxu2 %v2440_v9 }
  0x9c   : > { %982 = vmatmul.f32.gmra.mxu3 %v2440_v9 }
  0x9d   : > { %v339_v2 = vpop.f32.mrf.mxu0  ;;  %v461_v27 = vpop.f32.mrf.mxu2 }
  0x9e   : > { %v417_v31 = vpop.f32.mrf.mxu1  ;;  %v414_v37 = vadd.f32 %v413_v50, %v339_v2 }
  0x9f   : > { %v515_v42 = vpop.f32.mrf.mxu3 }
  0xa0   : > { %824 = vmatmul.f32.gmra.mxu0 %v2452_v21  ;;  %v462_v43 = vadd.f32 %v461_v27, %v414_v37  ;;  %v3781_v27 = vmov 920167782  }
  0xa1   : > { %886 = vmatmul.f32.gmra.mxu1 %v713_v46 }
  0xa2   : > { %940 = vmatmul.f32.gmra.mxu2 %v2466_v32  ;;  %v516_v46 = vadd.f32 %v515_v42, %v462_v43  ;;  %v3769_v42 = vmov 2131351028  }
  0xa4   : > { %986 = vmatmul.f32.gmra.mxu3 %v2466_v32 }
  0xa5   : > { %v347_v51 = vpop.f32.mrf.mxu0  ;;  %v466_v52 = vpop.f32.mrf.mxu2 }
  0xa6   : > { %v2549_v62 = vpop.f32.mrf.mxu1 }
  0xa7   : > { %v521_v8 = vpop.f32.mrf.mxu3 }
  0xa8   : > { %829 = vmatmul.f32.gmra.mxu0 %v2479_v41 }
  0xa9   : > { %892 = vmatmul.f32.gmra.mxu1 %v721_v60 }
  0xaa   : > { %944 = vmatmul.f32.gmra.mxu2 %v2485_v47 }
  0xac   : > { %990 = vmatmul.f32.gmra.mxu3 %v2485_v47  ;;  %v418_v47 = vadd.f32 %v417_v31, %v347_v51 }
  0xad   : > { %v355_v9 = vpop.f32.mrf.mxu0  ;;  %v2554_v16 = vpop.f32.mrf.mxu2 }
  0xae   : > { %v425_v17 = vpop.f32.mrf.mxu1  ;;  %v467_v49 = vadd.f32 %v466_v52, %v418_v47  ;;  %v3779_v52 = vmov 2102212464  }
  0xaf   : > { %v2556_v18 = vpop.f32.mrf.mxu3 }
  0xb0   : > { %834 = vmatmul.f32.gmra.mxu0 %v2496_v56  ;;  %v522_v56 = vadd.f32 %v521_v8, %v467_v49  ;;  %v3783_v49 = vmov 683565275  }
  0xb1   : > { %898 = vmatmul.f32.gmra.mxu1 %v729_v3 }
  0xb2   : > { %948 = vmatmul.f32.gmra.mxu2 %v2501_v7 }
  0xb4   : > { %994 = vmatmul.f32.gmra.mxu3 %v2501_v7 }
  0xb5   : > { %v363_v19 = vpop.f32.mrf.mxu0  ;;  %v2561_v20 = vpop.f32.mrf.mxu2 }
  0xb6   : > { %v2563_v21 = vadd.f32 %v425_v17, %v363_v19  ;;  %v429_v24 = vpop.f32.mrf.mxu1  ;;  %v3787_v19 = vmov 2475754826  }
  0xb7   : > { %v2565_v22 = vpop.f32.mrf.mxu3 }
  0xb8   : > { %839 = vmatmul.f32.gmra.mxu0 %v2507_v0  ;;  %v477_v37 = vadd.f32 %v2561_v20, %v2563_v21 }
  0xb9   : > { %904 = vmatmul.f32.gmra.mxu1 %v737_v11 }
  0xba   : > { %952 = vmatmul.f32.gmra.mxu2 %v2512_v4 }
  0xbc   : > { %998 = vmatmul.f32.gmra.mxu3 %v2512_v4  ;;  %v422_v4 = vadd.f32 %v2549_v62, %v355_v9 }
  0xbd   : > { %v371_v26 = vpop.f32.mrf.mxu0  ;;  %v2570_v39 = vpop.f32.mrf.mxu2 }
  0xbe   : > { %v2572_v28 = vadd.f32 %v429_v24, %v371_v26  ;;  %v433_v29 = vpop.f32.mrf.mxu1  ;;  %v472_v12 = vadd.f32 %v2554_v16, %v422_v4 }
  0xbf   : > { %v2574_v10 = vpop.f32.mrf.mxu3 }
  0xc0   : > { %844 = vmatmul.f32.gmra.mxu0 %v2518_v5  ;;  %v528_v16 = vadd.f32 %v2556_v18, %v472_v12 }
  0xc5   : > { %v379_v30 = vpop.f32.mrf.mxu0  ;;  %v2577_v32 = vpop.f32.mrf.mxu2 }
  0xc6   : > { %v2579_v33 = vadd.f32 %v433_v29, %v379_v30  ;;  %v437_v35 = vpop.f32.mrf.mxu1 }
  0xc7   : > { %v2581_v34 = vpop.f32.mrf.mxu3 }
  0xcd   : > { %v387_v38 = vpop.f32.mrf.mxu0  ;;  %v491_v40 = vpop.f32.mrf.mxu2 }
  0xce   : > { %v438_v41 = vadd.f32 %v437_v35, %v387_v38  ;;  %v621_v53 = vpop.f32.mrf.mxu1 }
  0xcf   : > { %v551_v13 = vpop.f32.mrf.mxu3 }
  0xd0   : > { %v492_v44 = vadd.f32 %v491_v40, %v438_v41 }
  0xd2   : > { %v2583_v45 = vadd.f32 %v551_v13, %v492_v44 }
  0xd5   : > { %v575_v15 = vpop.f32.mrf.mxu0  ;;  %v2607_v30 = vpop.f32.mrf.mxu2 }
  0xd6   : > { %v576_v48 = vadd.f32 %v575_v15, %v516_v46  ;;  %v625_v58 = vpop.f32.mrf.mxu1  ;;  %v487_v46 = vadd.f32 %v2577_v32, %v2579_v33 }
  0xd7   : > { %v2609_v35 = vpop.f32.mrf.mxu3 }
  0xd8   : > { %v2585_v54 = vadd.f32 %v621_v53, %v576_v48  ;;  %v482_v53 = vadd.f32 %v2570_v39, %v2572_v28 }
  0xda   : > { %3839 = vst [vmem:[#allocation2_spill] sm:$0xff] %v2585_v54  ;;  %v1005_v55 = vand.u32 2139095040, %v2585_v54  ;;  %v3768_v5 = vand.u32 2147483647, %v2585_v54 }
  0xdc   : > { %v1006_v57 = vshrl.u32 %v1005_v55, 23  ;;  %v1009_v50 = vand.u32 8388607, %v3768_v5 }
  0xdd   : > { %v579_v14 = vpop.f32.mrf.mxu0 }
  0xde   : > { %v2164_v59 = vadd.s32 4294967169, %v1006_v57  ;;  %v580_v60 = vadd.f32 %v579_v14, %v522_v56  ;;  %v1010_v38 = vor.u32 8388608, %v1009_v50  ;;  %v629_v55 = vpop.f32.mrf.mxu1  ;;  %v534_v56 = vadd.f32 %v2565_v22, %v477_v37 }
  0xdf   : > { %v2640_v57 = vadd.f32 %v2574_v10, %v482_v53  ;;  %v2643_v14 = vadd.f32 %v2581_v34, %v487_v46 }
  0xe0   : > { %v1012_v7 = vadd.s32 1, %v2164_v59  ;;  %v2588_v61 = vadd.f32 %v625_v58, %v580_v60  ;;  %v2629_v15 = vshll.u32 %v1010_v38, 8 }
  0xe2   : > { %3840 = vst [vmem:[#allocation3_spill] sm:$0xff] %v2588_v61  ;;  %vm1013_vm0 = vcmp.gt.s32.totalorder %v1012_v7, 0  ;;  %v1160_v0 = vand.u32 2139095040, %v2588_v61  ;;  %v3766_v40 = vand.u32 2147483647, %v2588_v61  ;;  %v2654_v22 = vand.u32 65535, %v2629_v15 }
  0xe3   : > { %v1014_v63 = vsel %vm1013_vm0, %v1012_v7, 0  ;;  %v1052_v53 = vshrl.u32 %v2629_v15, 16 }
  0xe4   : > { %v1016_v25 = vand.u32 31, %v1014_v63  ;;  %v1161_v1 = vshrl.u32 %v1160_v0, 23  ;;  %v2597_v2 = vshrl.u32 %v1014_v63, 5  ;;  %v1164_v33 = vand.u32 8388607, %v3766_v40 }
  0xe5   : > { %v583_v18 = vpop.f32.mrf.mxu0 }
  0xe6   : > { %v1017_v3 = vsub.s32 32, %v1016_v25  ;;  %v2167_v23 = vadd.s32 4294967169, %v1161_v1  ;;  %v1031_v31 = vshll.u32 %v3781_v27, %v1016_v25  ;;  %v1022_v24 = vshll.u32 %v3787_v19, %v1016_v25  ;;  %v701_v1 = vpop.f32.mrf.mxu2 }
  0xe7   : > { %v1025_v26 = vshll.u32 %v3769_v42, %v1016_v25  ;;  %v1028_v29 = vshll.u32 %v3779_v52, %v1016_v25  ;;  %vm1037_vm7 = vcmp.lt.s32.totalorder %v2597_v2, 4  ;;  %vm1034_vm8 = vcmp.lt.s32.totalorder %v2597_v2, 1 }
  0xe8   : > { %v1032_v11 = vshrl.u32 %v3772_v6, %v1017_v3  ;;  %v1167_v36 = vadd.s32 1, %v2167_v23  ;;  %v1023_v51 = vshrl.u32 %v3769_v42, %v1017_v3  ;;  %v1026_v62 = vshrl.u32 %v3779_v52, %v1017_v3 }
  0xe9   : > { %v1029_v8 = vshrl.u32 %v3781_v27, %v1017_v3  ;;  %v1020_v21 = vshrl.u32 %v3787_v19, %v1017_v3  ;;  %vm1036_vm9 = vcmp.lt.s32.totalorder %v2597_v2, 3  ;;  %v584_v48 = vadd.f32 %v583_v18, %v528_v16 }
  0xea   : > { %vm1168_vm6 = vcmp.gt.s32.totalorder %v1167_v36, 0  ;;  %v1033_v9 = vor.u32 %v1032_v11, %v1031_v31  ;;  %v1024_v41 = vor.u32 %v1023_v51, %v1022_v24  ;;  %v1027_v13 = vor.u32 %v1026_v62, %v1025_v26 }
  0xeb   : > { %v1169_v17 = vsel %vm1168_vm6, %v1167_v36, 0  ;;  %v1030_v43 = vor.u32 %v1029_v8, %v1028_v29  ;;  %v1019_v39 = vshll.u32 %v3783_v49, %v1016_v25  ;;  %vm1035_vm10 = vcmp.lt.s32.totalorder %v2597_v2, 2 }
  0xec   : > { %v2615_v44 = vand.u32 31, %v1169_v17  ;;  %v1047_v20 = vsel %vm1037_vm7, %v1033_v9, 1326507024  ;;  %v1046_v28 = vsel %vm1034_vm8, %v1024_v41, %v1027_v13  ;;  %v1018_v60 = vshrl.u32 %v3783_v49, %v1017_v3  ;;  %v771_v3 = vpop.f32.mrf.mxu3 }
  0xed   : > { %v1048_v32 = vsel %vm1036_vm9, %v1030_v43, %v1047_v20  ;;  %v1021_v58 = vor.u32 %v1020_v21, %v1019_v39  ;;  %v2656_v10 = vadd.f32 %v629_v55, %v584_v48  ;;  %v1039_v34 = vsel %vm1037_vm7, %v1027_v13, 2102212464  ;;  %v587_v12 = vpop.f32.mrf.mxu0 }
  0xee   : > { %v2625_v47 = vsub.s32 32, %v2615_v44  ;;  %v2651_v7 = vsel %vm1035_vm10, %v1046_v28, %v1048_v32  ;;  %v1165_v63 = vor.u32 8388608, %v1164_v33  ;;  %v1186_v25 = vshll.u32 %v3781_v27, %v2615_v44 }
  0xef   : > { %3841 = vst [vmem:[#allocation4_spill] sm:$0xff] %v2656_v10  ;;  %v1043_v4 = vsel %vm1037_vm7, %v1030_v43, 920167782  ;;  %v2666_v23 = vshrl.u32 %v1169_v17, 5  ;;  %v1038_v50 = vsel %vm1034_vm8, %v1018_v60, %v1021_v58  ;;  %v1054_v31 = vshrl.u32 %v2651_v7, 16 }
  0xf0   : > { %v1187_v59 = vshrl.u32 %v3772_v6, %v2625_v47  ;;  %v1178_v0 = vshrl.u32 %v3769_v42, %v2625_v47  ;;  %v1181_v11 = vshrl.u32 %v3779_v52, %v2625_v47  ;;  %v1184_v36 = vshrl.u32 %v3781_v27, %v2625_v47 }
  0xf1   : > { %v1177_v51 = vshll.u32 %v3787_v19, %v2615_v44  ;;  %v1042_v8 = vsel %vm1034_vm8, %v1021_v58, %v1024_v41  ;;  %v1180_v9 = vshll.u32 %v3769_v42, %v2615_v44  ;;  %v1183_v17 = vshll.u32 %v3779_v52, %v2615_v44 }
  0xf2   : > { %v1188_v62 = vor.u32 %v1187_v59, %v1186_v25  ;;  %v1315_v16 = vand.u32 2139095040, %v2656_v10  ;;  %v1040_v24 = vsel %vm1036_vm9, %v1024_v41, %v1039_v34  ;;  %v1044_v26 = vsel %vm1036_vm9, %v1027_v13, %v1043_v4  ;;  %v633_v13 = vpop.f32.mrf.mxu1 }
  0xf3   : > { %v1179_v29 = vor.u32 %v1178_v0, %v1177_v51  ;;  %v588_v37 = vadd.f32 %v587_v12, %v534_v56  ;;  %v1182_v38 = vor.u32 %v1181_v11, %v1180_v9  ;;  %v1185_v18 = vor.u32 %v1184_v36, %v1183_v17 }
  0xf4   : > { %vm1192_vm11 = vcmp.lt.s32.totalorder %v2666_v23, 4  ;;  %v1316_v43 = vshrl.u32 %v1315_v16, 23  ;;  %v2691_v46 = vmul.u32 %v1054_v31, %v2654_v22  ;;  %v2695_v20 = vadd.f32 %v2609_v35, %v2607_v30  ;;  %v2725_v34 = vpop.f32.mrf.mxu3 }
  0xf5   : > { %v1202_v41 = vsel %vm1192_vm11, %v1188_v62, 1326507024  ;;  %v2701_v21 = vsel %vm1035_vm10, %v1038_v50, %v1040_v24  ;;  %v1045_v48 = vsel %vm1035_vm10, %v1042_v8, %v1044_v26  ;;  %v2705_v39 = vshll.u32 %v1165_v63, 8 }
  0xf6   : > { %3842 = vst [vmem:[#allocation5_spill] sm:$0xff] %v2701_v21  ;;  %v2707_v28 = vadd.f32 %v771_v3, %v701_v1  ;;  %v1053_v32 = vand.u32 65535, %v2651_v7  ;;  %vm1189_vm12 = vcmp.lt.s32.totalorder %v2666_v23, 1  ;;  %vm1191_vm13 = vcmp.lt.s32.totalorder %v2666_v23, 3  ;;  %v2723_v7 = vpop.f32.mrf.mxu2 }
  0xf7   : > { %3843 = vst [vmem:[#allocation6_spill] sm:$0xff] %v2705_v39  ;;  %v2170_v30 = vadd.s32 4294967169, %v1316_v43  ;;  %v1175_v35 = vshrl.u32 %v3787_v19, %v2625_v47  ;;  %v1201_v33 = vsel %vm1189_vm12, %v1179_v29, %v1182_v38  ;;  %v1203_v2 = vsel %vm1191_vm13, %v1185_v18, %v1202_v41 }
  0xf8   : > { %3844 = vst [vmem:[#allocation7_spill] sm:$0xff] %v2707_v28  ;;  %v2718_v55 = vadd.f32 %v633_v13, %v588_v37  ;;  %v1059_v56 = vshll.u32 %v2691_v46, 16  ;;  %v1075_v58 = vand.u32 65535, %v1045_v48  ;;  %v1076_v63 = vshrl.u32 %v1045_v48, 16 }
  0xf9   : > { %v1322_v60 = vadd.s32 1, %v2170_v30  ;;  %v1174_v0 = vshll.u32 %v3783_v49, %v2615_v44  ;;  %vm1190_vm14 = vcmp.lt.s32.totalorder %v2666_v23, 2  ;;  %v1055_v1 = vmul.u32 %v1053_v32, %v2654_v22 }
  0xfa   : > { %3845 = vst [vmem:[#allocation8_spill] sm:$0xff] %v2718_v55  ;;  %v1470_v25 = vand.u32 2139095040, %v2718_v55  ;;  %v2734_v3 = vsel %vm1190_vm14, %v1201_v33, %v1203_v2  ;;  %v2737_v4 = vand.u32 65535, %v2705_v39  ;;  %v2740_v36 = vshrl.u32 %v2705_v39, 16 }
  0xfb   : > { %vm1323_vm15 = vcmp.gt.s32.totalorder %v1322_v60, 0  ;;  %v1176_v11 = vor.u32 %v1175_v35, %v1174_v0  ;;  %v2742_v50 = vmul.u32 %v1053_v32, %v1052_v53  ;;  %v1058_v51 = vmul.u32 %v1054_v31, %v1052_v53 }
  0xfc   : > { %v1324_v12 = vsel %vm1323_vm15, %v1322_v60, 0  ;;  %v1471_v44 = vshrl.u32 %v1470_v25, 23  ;;  %vm1063_vm1 = vc.u32 %v1055_v1, %v1059_v56  ;;  %v1173_v8 = vshrl.u32 %v3783_v49, %v2625_v47  ;;  %v779_v0 = vpop.f32.mrf.mxu3 }
  0xfd   : > { %v2744_v62 = vand.u32 31, %v1324_v12  ;;  %v1194_v9 = vsel %vm1192_vm11, %v1182_v38, 2102212464  ;;  %v1198_v17 = vsel %vm1192_vm11, %v1185_v18, 920167782  ;;  %v1209_v16 = vshrl.u32 %v2734_v3, 16 }
  0xfe   : > { %v2754_v24 = vmul.u32 %v1075_v58, %v2654_v22  ;;  %v2757_v26 = vmul.u32 %v1076_v63, %v2654_v22  ;;  %v2173_v37 = vadd.s32 4294967169, %v1471_v44  ;;  %v3775_v43 = vmov 0  }
  0xff   : > { %v2760_v31 = vsub.s32 32, %v2744_v62  ;;  %v1064_v47 = vsel %vm1063_vm1, 1, %v3775_v43  ;;  %v2763_v41 = vmul.u32 %v1075_v58, %v1052_v53  ;;  %v2765_v13 = vmul.u32 %v1076_v63, %v1052_v53  ;;  %v717_v63 = vpop.f32.mrf.mxu2 }
 0x100   : > { %v1193_v18 = vsel %vm1189_vm12, %v1173_v8, %v1176_v11  ;;  %v1195_v48 = vsel %vm1191_vm13, %v1179_v29, %v1194_v9  ;;  %v1197_v22 = vsel %vm1189_vm12, %v1176_v11, %v1179_v29  ;;  %v1199_v32 = vsel %vm1191_vm13, %v1182_v38, %v1198_v17 }
 0x101   : > { %v3767_v30 = vand.u32 2147483647, %v2656_v10  ;;  %v2777_v35 = vmul.u32 %v1209_v16, %v2737_v4  ;;  %v2779_v33 = vshrl.u32 %v1324_v12, 5  ;;  %v1341_v53 = vshll.u32 %v3781_v27, %v2744_v62 }
 0x102   : > { %v1342_v2 = vshrl.u32 %v3772_v6, %v2760_v31  ;;  %v1333_v58 = vshrl.u32 %v3769_v42, %v2760_v31  ;;  %v1336_v29 = vshrl.u32 %v3779_v52, %v2760_v31  ;;  %v1339_v38 = vshrl.u32 %v3781_v27, %v2760_v31 }
 0x103   : > { %v1477_v60 = vadd.s32 1, %v2173_v37  ;;  %v1200_v25 = vsel %vm1190_vm14, %v1197_v22, %v1199_v32  ;;  %v1208_v11 = vand.u32 65535, %v2734_v3  ;;  %v2794_v44 = vadd.f32 %v779_v0, %v717_v63  ;;  %v591_v32 = vpop.f32.mrf.mxu0 }
 0x104   : > { %v1343_v12 = vor.u32 %v1342_v2, %v1341_v53  ;;  %v1319_v8 = vand.u32 8388607, %v3767_v30  ;;  %v1332_v9 = vshll.u32 %v3787_v19, %v2744_v62  ;;  %v1335_v17 = vshll.u32 %v3769_v42, %v2744_v62 }
 0x105   : > { %3846 = vst [vmem:[#allocation9_spill] sm:$0xff] %v2794_v44  ;;  %v1338_v37 = vshll.u32 %v3779_v52, %v2744_v62  ;;  %v2805_v22 = vadd.s32 %v1059_v56, %v1055_v1  ;;  %v1214_v3 = vshll.u32 %v2777_v35, 16  ;;  %vm1478_vm2 = vcmp.gt.s32.totalorder %v1477_v60, 0 }
 0x106   : > { %v1334_v53 = vor.u32 %v1333_v58, %v1332_v9  ;;  %v1337_v2 = vor.u32 %v1336_v29, %v1335_v17  ;;  %vm1347_vm3 = vcmp.lt.s32.totalorder %v2779_v33, 4  ;;  %v2809_v0 = vadd.s32 %v1064_v47, %v1058_v51 }
 0x107   : > { %v1340_v63 = vor.u32 %v1339_v38, %v1338_v37  ;;  %v2813_v30 = vsel %vm1190_vm14, %v1193_v18, %v1195_v48  ;;  %v1230_v5 = vand.u32 65535, %v1200_v25  ;;  %v1357_v56 = vsel %vm1347_vm3, %v1343_v12, 1326507024 }
 0x108   : > { %3847 = vst [vmem:[#allocation10_spill] sm:$0xff] %v2813_v30  ;;  %v1210_v1 = vmul.u32 %v1208_v11, %v2737_v4  ;;  %v1231_v59 = vshrl.u32 %v1200_v25, 16  ;;  %v1320_v40 = vor.u32 8388608, %v1319_v8  ;;  %v1479_v42 = vsel %vm1478_vm2, %v1477_v60, 0 }
 0x109   : > { %v1330_v58 = vshrl.u32 %v3787_v19, %v2760_v31  ;;  %vm1344_vm4 = vcmp.lt.s32.totalorder %v2779_v33, 1  ;;  %vm1346_vm5 = vcmp.lt.s32.totalorder %v2779_v33, 3  ;;  %v592_v23 = vadd.f32 %v591_v32, %v2640_v57  ;;  %v637_v57 = vpop.f32.mrf.mxu1 }
 0x10a   : > { %vm1218_vm0 = vc.u32 %v1210_v1, %v1214_v3  ;;  %v1356_v51 = vsel %vm1344_vm4, %v1334_v53, %v1337_v2  ;;  %v1358_v47 = vsel %vm1346_vm5, %v1340_v63, %v1357_v56  ;;  %v3771_v18 = vand.u32 2147483647, %v2718_v55 }
 0x10b   : > { %v2829_v48 = vmul.u32 %v1208_v11, %v2740_v36  ;;  %v1329_v38 = vshll.u32 %v3783_v49, %v2744_v62  ;;  %v1481_v60 = vand.u32 31, %v1479_v42  ;;  %v1213_v25 = vmul.u32 %v1209_v16, %v2740_v36 }
 0x10c   : > { %v2837_v12 = vmul.u32 %v1230_v5, %v2737_v4  ;;  %vm1345_vm6 = vcmp.lt.s32.totalorder %v2779_v33, 2  ;;  %v2842_v8 = vadd.f32 %v2725_v34, %v2723_v7  ;;  %v1219_v11 = vsel %vm1218_vm0, 1, %v3775_v43 }
 0x10d   : > { %v1331_v9 = vor.u32 %v1330_v58, %v1329_v38  ;;  %v2847_v17 = vsel %vm1345_vm6, %v1356_v51, %v1358_v47  ;;  %v2849_v62 = vshll.u32 %v1320_v40, 8  ;;  %v2852_v16 = vmul.u32 %v1231_v59, %v2737_v4  ;;  %v595_v4 = vpop.f32.mrf.mxu0 }
 0x10e   : > { %3848 = vst [vmem:[#allocation11_spill] sm:$0xff] %v2842_v8  ;;  %v1353_v37 = vsel %vm1347_vm3, %v1340_v63, 920167782  ;;  %v2858_v32 = vand.u32 8388607, %v3771_v18  ;;  %v2860_v7 = vadd.f32 %v637_v57, %v592_v23  ;;  %v2864_v56 = vmul.u32 %v1230_v5, %v2740_v36 }
 0x10f   : > { %3849 = vst [vmem:[#allocation12_spill] sm:$0xff] %v2849_v62  ;;  %v2867_v40 = vmul.u32 %v1231_v59, %v2740_v36  ;;  %v1482_v58 = vsub.s32 32, %v1481_v60  ;;  %v2869_v51 = vadd.s32 %v1214_v3, %v1210_v1  ;;  %v2871_v47 = vadd.s32 %v1219_v11, %v1213_v25 }
 0x110   : > { %3850 = vst [vmem:[#allocation13_spill] sm:$0xff] %v2860_v7  ;;  %v1349_v63 = vsel %vm1347_vm3, %v1337_v2, 2102212464  ;;  %v3774_v23 = vshrl.u32 %v2847_v17, 16  ;;  %v1328_v38 = vshrl.u32 %v3783_v49, %v2760_v31  ;;  %v1352_v5 = vsel %vm1344_vm4, %v1331_v9, %v1334_v53 }
 0x111   : > { %v1354_v59 = vsel %vm1346_vm5, %v1337_v2, %v1353_v37  ;;  %v2883_v36 = vand.u32 65535, %v2849_v62  ;;  %v2886_v3 = vshrl.u32 %v2849_v62, 16  ;;  %v1475_v1 = vor.u32 8388608, %v2858_v32 }
 0x112   : > { %v1625_v57 = vand.u32 2139095040, %v2860_v7  ;;  %v596_v25 = vadd.f32 %v595_v4, %v2643_v14  ;;  %v1348_v31 = vsel %vm1344_vm4, %v1328_v38, %v1331_v9  ;;  %v1350_v11 = vsel %vm1346_vm5, %v1334_v53, %v1349_v63 }
 0x113   : > { %v1494_v2 = vshrl.u32 %v3781_v27, %v1482_v58  ;;  %v1497_v37 = vshrl.u32 %v3772_v6, %v1482_v58  ;;  %v2899_v18 = vsel %vm1345_vm6, %v1352_v5, %v1354_v59  ;;  %v2904_v32 = vmul.u32 %v3774_v23, %v2883_v36 }
 0x114   : > { %v1493_v14 = vshll.u32 %v3779_v52, %v1481_v60  ;;  %v1626_v4 = vshrl.u32 %v1625_v57, 23  ;;  %v1485_v9 = vshrl.u32 %v3787_v19, %v1482_v58  ;;  %v3852_v38 = vmov 2131351028  }
 0x115   : > { %3851 = vst [vmem:[#allocation14_spill] sm:$0xff] %v2904_v32  ;;  %v1488_v53 = vshrl.u32 %v3852_v38, %v1482_v58  ;;  %v1491_v63 = vshrl.u32 %v3779_v52, %v1482_v58  ;;  %v1496_v29 = vshll.u32 %v3781_v27, %v1481_v60  ;;  %v1363_v34 = vand.u32 65535, %v2847_v17 }
 0x116   : > { %v1480_v5 = vshrl.u32 %v1479_v42, 5  ;;  %v1484_v59 = vshll.u32 %v3783_v49, %v1481_v60  ;;  %v1487_v6 = vshll.u32 %v3787_v19, %v1481_v60  ;;  %v1490_v23 = vshll.u32 %v3852_v38, %v1481_v60  ;;  %v725_v42 = vpop.f32.mrf.mxu2  ;;  %v783_v60 = vpop.f32.mrf.mxu3 }
 0x117   : > { %v1495_v43 = vor.u32 %v1494_v2, %v1493_v14  ;;  %v1498_v44 = vor.u32 %v1497_v37, %v1496_v29  ;;  %v2176_v57 = vadd.s32 4294967169, %v1626_v4  ;;  %v2917_v55 = vsel %vm1345_vm6, %v1348_v31, %v1350_v11  ;;  %v641_v2 = vpop.f32.mrf.mxu1 }
 0x118   : > { %3853 = vst [vmem:[#allocation15_spill] sm:$0xff] %v2917_v55  ;;  %v1369_v52 = vshll.u32 %v2904_v32, 16  ;;  %v1385_v27 = vand.u32 65535, %v2899_v18  ;;  %v1386_v49 = vshrl.u32 %v2899_v18, 16  ;;  %v1486_v10 = vor.u32 %v1485_v9, %v1484_v59 }
 0x119   : > { %v1489_v19 = vor.u32 %v1488_v53, %v1487_v6  ;;  %v1492_v28 = vor.u32 %v1491_v63, %v1490_v23  ;;  %v1365_v29 = vmul.u32 %v1363_v34, %v2883_v36  ;;  %vm1502_vm7 = vcmp.lt.s32.totalorder %v1480_v5, 4 }
 0x11a   : > { %v1632_v33 = vadd.s32 1, %v2176_v57  ;;  %v2924_v31 = vadd.f32 %v783_v60, %v725_v42  ;;  %vm1499_vm8 = vcmp.lt.s32.totalorder %v1480_v5, 1  ;;  %vm1501_vm9 = vcmp.lt.s32.totalorder %v1480_v5, 3 }
 0x11b   : > { %v1508_v11 = vsel %vm1502_vm7, %v1495_v43, 920167782  ;;  %v1512_v37 = vsel %vm1502_vm7, %v1498_v44, 1326507024  ;;  %v2927_v14 = vmul.u32 %v1363_v34, %v2886_v3  ;;  %vm1373_vm10 = vc.u32 %v1365_v29, %v1369_v52 }
 0x11c   : > { %3854 = vst [vmem:[#allocation16_spill] sm:$0xff] %v2924_v31  ;;  %vm1633_vm11 = vcmp.gt.s32.totalorder %v1632_v33, 0  ;;  %v2929_v18 = vadd.f32 %v641_v2, %v596_v25  ;;  %v3857_v6 = vmov 683565275   ;;  %v1504_v4 = vsel %vm1502_vm7, %v1492_v28, 2102212464 }
 0x11d   : > { %3855 = vst [vmem:[#allocation17_spill] sm:$0xff] %v2927_v14  ;;  %v1483_v23 = vshrl.u32 %v3857_v6, %v1482_v58  ;;  %v1507_v9 = vsel %vm1499_vm8, %v1486_v10, %v1489_v19  ;;  %v1634_v53 = vsel %vm1633_vm11, %v1632_v33, 0  ;;  %v1509_v63 = vsel %vm1501_vm9, %v1492_v28, %v1508_v11 }
 0x11e   : > { %3856 = vst [vmem:[#allocation18_spill] sm:$0xff] %v2929_v18  ;;  %v1511_v59 = vsel %vm1499_vm8, %v1489_v19, %v1492_v28  ;;  %v1513_v57 = vsel %vm1501_vm9, %v1495_v43, %v1512_v37  ;;  %v2936_v44 = vand.u32 31, %v1634_v53  ;;  %v3858_v34 = vmov 0   ;;  %v733_v31 = vpop.f32.mrf.mxu2  ;;  %v787_v61 = vpop.f32.mrf.mxu3 }
 0x11f   : > { %v1374_v42 = vsel %vm1373_vm10, 1, %v3858_v34  ;;  %vm1500_vm12 = vcmp.lt.s32.totalorder %v1480_v5, 2  ;;  %v2941_v60 = vshll.u32 %v1475_v1, 8  ;;  %v1503_v58 = vsel %vm1499_vm8, %v1483_v23, %v1486_v10  ;;  %v645_v39 = vpop.f32.mrf.mxu1 }
 0x120   : > { %v1505_v2 = vsel %vm1501_vm9, %v1489_v19, %v1504_v4  ;;  %v2946_v33 = vsub.s32 32, %v2936_v44  ;;  %v1780_v28 = vand.u32 2139095040, %v2929_v18  ;;  %v3860_v43 = vshrl.u32 %v2847_v17, 16 }
 0x121   : > { %3859 = vst [vmem:[#allocation19_spill] sm:$0xff] %v2941_v60  ;;  %v2953_v37 = vmul.u32 %v1385_v27, %v2883_v36  ;;  %v1510_v25 = vsel %vm1500_vm12, %v1507_v9, %v1509_v63  ;;  %v1514_v1 = vsel %vm1500_vm12, %v1511_v59, %v1513_v57  ;;  %v2959_v19 = vmul.u32 %v1386_v49, %v2883_v36 }
 0x122   : > { %v1368_v11 = vmul.u32 %v3860_v43, %v2886_v3  ;;  %v2962_v23 = vmul.u32 %v1385_v27, %v2886_v3  ;;  %v2965_v4 = vmul.u32 %v1386_v49, %v2886_v3  ;;  %v2967_v17 = vadd.s32 %v1369_v52, %v1365_v29 }
 0x123   : > { %3861 = vst [vmem:[#allocation20_spill] sm:$0xff] %v2953_v37  ;;  %v2972_v8 = vsel %vm1500_vm12, %v1503_v58, %v1505_v2  ;;  %v3867_v9 = vand.u32 2147483647, %v2860_v7  ;;  %v1519_v59 = vshrl.u32 %v1514_v1, 16  ;;  %v1540_v57 = vand.u32 65535, %v1510_v25 }
 0x124   : > { %3862 = vst [vmem:[#allocation21_spill] sm:$0xff] %v2962_v23  ;;  %v2969_v43 = vadd.s32 %v1374_v42, %v1368_v11  ;;  %v3868_v36 = vmov 1326507024   ;;  %v1781_v27 = vshrl.u32 %v1780_v28, 23  ;;  %v1516_v49 = vand.u32 65535, %v2941_v60 }
 0x125   : > { %3863 = vst [vmem:[#allocation22_spill] sm:$0xff] %v2965_v4  ;;  %v1629_v63 = vand.u32 8388607, %v3867_v9  ;;  %v1652_v10 = vshrl.u32 %v3868_v36, %v2946_v33  ;;  %v1517_v52 = vshrl.u32 %v2941_v60, 16  ;;  %v1541_v3 = vshrl.u32 %v1510_v25, 16 }
 0x126   : > { %3864 = vst [vmem:[#allocation23_spill] sm:$0xff] %v2967_v17  ;;  %v2980_v29 = vadd.f32 %v787_v61, %v733_v31  ;;  %v1518_v5 = vand.u32 65535, %v1514_v1  ;;  %v2984_v58 = vshrl.u32 %v1634_v53, 5  ;;  %v3870_v2 = vmov 920167782   ;;  %v599_v31 = vpop.f32.mrf.mxu0 }
 0x127   : > { %3865 = vst [vmem:[#allocation24_spill] sm:$0xff] %v2969_v43  ;;  %v1651_v11 = vshll.u32 %v3870_v2, %v2936_v44  ;;  %v1643_v28 = vshrl.u32 %v3852_v38, %v2946_v33  ;;  %v3871_v9 = vmov 2102212464   ;;  %v1649_v25 = vshrl.u32 %v3870_v2, %v2946_v33 }
 0x128   : > { %3866 = vst [vmem:[#allocation25_spill] sm:$0xff] %v2972_v8  ;;  %v1646_v7 = vshrl.u32 %v3871_v9, %v2946_v33  ;;  %v2179_v61 = vadd.s32 4294967169, %v1781_v27  ;;  %v2994_v1 = vmul.u32 %v1519_v59, %v1516_v49  ;;  %v1630_v53 = vor.u32 8388608, %v1629_v63 }
 0x129   : > { %3869 = vst [vmem:[#allocation26_spill] sm:$0xff] %v2980_v29  ;;  %v2996_v29 = vmul.u32 %v1540_v57, %v1516_v49  ;;  %v1653_v42 = vor.u32 %v1652_v10, %v1651_v11  ;;  %v3873_v8 = vmov 2475754826   ;;  %v1645_v55 = vshll.u32 %v3852_v38, %v2936_v44 }
 0x12a   : > { %v1642_v60 = vshll.u32 %v3873_v8, %v2936_v44  ;;  %v1648_v62 = vshll.u32 %v3871_v9, %v2936_v44  ;;  %v1787_v54 = vadd.s32 1, %v2179_v61  ;;  %v3004_v30 = vmul.u32 %v1541_v3, %v1516_v49 }
 0x12b   : > { %3872 = vst [vmem:[#allocation27_spill] sm:$0xff] %v2996_v29  ;;  %v3006_v27 = vmul.u32 %v1540_v57, %v1517_v52  ;;  %vm1657_vm13 = vcmp.lt.s32.totalorder %v2984_v58, 4  ;;  %v600_v29 = vadd.f32 %v599_v31, %v2583_v45  ;;  %v1647_v10 = vor.u32 %v1646_v7, %v1645_v55 }
 0x12c   : > { %3874 = vst [vmem:[#allocation28_spill] sm:$0xff] %v3004_v30  ;;  %v1644_v63 = vor.u32 %v1643_v28, %v1642_v60  ;;  %v1650_v11 = vor.u32 %v1649_v25, %v1648_v62  ;;  %vm1788_vm14 = vcmp.gt.s32.totalorder %v1787_v54, 0  ;;  %v3010_v43 = vmul.u32 %v1518_v5, %v1517_v52 }
 0x12d   : > { %3875 = vst [vmem:[#allocation29_spill] sm:$0xff] %v3006_v27  ;;  %v3012_v32 = vmul.u32 %v1541_v3, %v1517_v52  ;;  %v1667_v61 = vsel %vm1657_vm13, %v1653_v42, 1326507024  ;;  %v3016_v4 = vshll.u32 %v1630_v53, 8  ;;  %v3018_v57 = vmul.u32 %v1518_v5, %v1516_v49 }
 0x12e   : > { %3876 = vst [vmem:[#allocation30_spill] sm:$0xff] %v3010_v43  ;;  %v3805_v27 = vshll.u32 %v2994_v1, 16  ;;  %v1640_v45 = vshrl.u32 %v3873_v8, %v2946_v33  ;;  %v3804_v55 = vand.u32 2147483647, %v2929_v18  ;;  %vm1654_vm15 = vcmp.lt.s32.totalorder %v2984_v58, 1 }
 0x12f   : > { %3877 = vst [vmem:[#allocation31_spill] sm:$0xff] %v3012_v32  ;;  %vm1656_vm1 = vcmp.lt.s32.totalorder %v2984_v58, 3  ;;  %v1789_v62 = vsel %vm1788_vm14, %v1787_v54, 0  ;;  %v3026_v7 = vadd.f32 %v645_v39, %v600_v29  ;;  %v1639_v60 = vshll.u32 %v3857_v6, %v2936_v44 }
 0x130   : > { %3878 = vst [vmem:[#allocation32_spill] sm:$0xff] %v3016_v4  ;;  %v1666_v49 = vsel %vm1654_vm15, %v1644_v63, %v1647_v10  ;;  %v1668_v3 = vsel %vm1656_vm1, %v1650_v11, %v1667_v61  ;;  %v1791_v5 = vand.u32 31, %v1789_v62  ;;  %v1523_v42 = vmul.u32 %v1519_v59, %v1517_v52  ;;  %v815_v59 = vpop.f32.mrf.mxu0 }
 0x131   : > { %3879 = vst [vmem:[#allocation33_spill] sm:$0xff] %v3026_v7  ;;  %v3036_v25 = vand.u32 65535, %v3016_v4  ;;  %v1641_v39 = vor.u32 %v1640_v45, %v1639_v60  ;;  %vm1655_vm2 = vcmp.lt.s32.totalorder %v2984_v58, 2  ;;  %v1784_v44 = vand.u32 8388607, %v3804_v55 }
 0x132   : > { %v3042_v29 = vsub.s32 32, %v1791_v5  ;;  %vm3047_vm3 = vc.u32 %v3018_v57, %v3805_v27  ;;  %v1638_v52 = vshrl.u32 %v3857_v6, %v2946_v33  ;;  %v3055_v31 = vsel %vm1655_vm2, %v1666_v49, %v1668_v3 }
 0x133   : > { %v1935_v53 = vand.u32 2139095040, %v3026_v7  ;;  %v1659_v61 = vsel %vm1657_vm13, %v1647_v10, 2102212464  ;;  %v1663_v45 = vsel %vm1657_vm13, %v1650_v11, 920167782  ;;  %v3062_v60 = vshrl.u32 %v1789_v62, 5 }
 0x134   : > { %v1798_v55 = vshrl.u32 %v3852_v38, %v3042_v29  ;;  %v1801_v33 = vshrl.u32 %v3871_v9, %v3042_v29  ;;  %v1804_v49 = vshrl.u32 %v3870_v2, %v3042_v29  ;;  %v1806_v3 = vshll.u32 %v3870_v2, %v1791_v5 }
 0x135   : > { %v1807_v28 = vshrl.u32 %v3868_v36, %v3042_v29  ;;  %v1658_v54 = vsel %vm1654_vm15, %v1638_v52, %v1641_v39  ;;  %v1674_v11 = vshrl.u32 %v3055_v31, 16  ;;  %v1785_v62 = vor.u32 8388608, %v1784_v44 }
 0x136   : > { %v1797_v27 = vshll.u32 %v3873_v8, %v1791_v5  ;;  %v1800_v18 = vshll.u32 %v3852_v38, %v1791_v5  ;;  %v1803_v32 = vshll.u32 %v3871_v9, %v1791_v5  ;;  %v1936_v30 = vshrl.u32 %v1935_v53, 23 }
 0x137   : > { %v1808_v43 = vor.u32 %v1807_v28, %v1806_v3  ;;  %v1660_v23 = vsel %vm1656_vm1, %v1644_v63, %v1659_v61  ;;  %v1662_v17 = vsel %vm1654_vm15, %v1641_v39, %v1644_v63  ;;  %v1664_v52 = vsel %vm1656_vm1, %v1647_v10, %v1663_v45  ;;  %v741_v10 = vpop.f32.mrf.mxu2  ;;  %v791_v39 = vpop.f32.mrf.mxu3 }
 0x138   : > { %v1799_v14 = vor.u32 %v1798_v55, %v1797_v27  ;;  %v1802_v37 = vor.u32 %v1801_v33, %v1800_v18  ;;  %v1805_v44 = vor.u32 %v1804_v49, %v1803_v32  ;;  %vm1812_vm4 = vcmp.lt.s32.totalorder %v3062_v60, 4  ;;  %v869_v3 = vpop.f32.mrf.mxu1 }
 0x139   : > { %v2182_v21 = vadd.s32 4294967169, %v1936_v30  ;;  %v1529_v28 = vsel %vm3047_vm3, 1, %v3858_v34  ;;  %v1672_v53 = vshrl.u32 %v3016_v4, 16  ;;  %v1795_v61 = vshrl.u32 %v3873_v8, %v3042_v29 }
 0x13a   : > { %v1822_v63 = vsel %vm1812_vm4, %v1808_v43, 1326507024  ;;  %v3096_v27 = vsel %vm1655_vm2, %v1658_v54, %v1660_v23  ;;  %v1665_v32 = vsel %vm1655_vm2, %v1662_v17, %v1664_v52  ;;  %v3101_v30 = vmul.u32 %v1674_v11, %v3036_v25 }
 0x13b   : > { %3882 = vst [vmem:[#allocation34_spill] sm:$0xff] %v3096_v27  ;;  %v3103_v18 = vshll.u32 %v1785_v62, 8  ;;  %v1794_v55 = vshll.u32 %v3857_v6, %v1791_v5  ;;  %vm1809_vm5 = vcmp.lt.s32.totalorder %v3062_v60, 1  ;;  %vm1811_vm0 = vcmp.lt.s32.totalorder %v3062_v60, 3 }
 0x13c   : > { %v1942_v43 = vadd.s32 1, %v2182_v21  ;;  %v1821_v23 = vsel %vm1809_vm5, %v1799_v14, %v1802_v37  ;;  %v1823_v17 = vsel %vm1811_vm0, %v1805_v44, %v1822_v63  ;;  %v3816_v58 = vand.u32 2147483647, %v3026_v7 }
 0x13d   : > { %3883 = vst [vmem:[#allocation35_spill] sm:$0xff] %v3103_v18  ;;  %v3113_v54 = vadd.f32 %v791_v39, %v741_v10  ;;  %v3885_v5 = vshll.u32 %v2994_v1, 16  ;;  %v3120_v33 = vadd.s32 %v1529_v28, %v1523_v42  ;;  %v1673_v21 = vand.u32 65535, %v3055_v31 }
 0x13e   : > { %v1796_v49 = vor.u32 %v1795_v61, %v1794_v55  ;;  %vm1810_vm6 = vcmp.lt.s32.totalorder %v3062_v60, 2  ;;  %v1818_v62 = vsel %vm1812_vm4, %v1805_v44, 920167782  ;;  %v816_v52 = vadd.f32 %v815_v59, %v2695_v20 }
 0x13f   : > { %3884 = vst [vmem:[#allocation36_spill] sm:$0xff] %v3113_v54  ;;  %v3118_v45 = vadd.s32 %v3885_v5, %v3018_v57  ;;  %v1679_v63 = vshll.u32 %v3101_v30, 16  ;;  %v1695_v10 = vand.u32 65535, %v1665_v32  ;;  %v1824_v57 = vsel %vm1810_vm6, %v1821_v23, %v1823_v17 }
 0x140   : > { %vm1943_vm7 = vcmp.gt.s32.totalorder %v1942_v43, 0  ;;  %v1696_v42 = vshrl.u32 %v1665_v32, 16  ;;  %v1814_v31 = vsel %vm1812_vm4, %v1802_v37, 2102212464  ;;  %v1826_v28 = vand.u32 65535, %v3103_v18 }
 0x141   : > { %v1939_v61 = vand.u32 8388607, %v3816_v58  ;;  %v1675_v44 = vmul.u32 %v1673_v21, %v3036_v25  ;;  %v1793_v20 = vshrl.u32 %v3857_v6, %v3042_v29  ;;  %v1817_v55 = vsel %vm1809_vm5, %v1796_v49, %v1799_v14 }
 0x142   : > { %v1819_v39 = vsel %vm1811_vm0, %v1802_v37, %v1818_v62  ;;  %v3144_v32 = vmul.u32 %v1673_v21, %v1672_v53  ;;  %v1827_v59 = vshrl.u32 %v3103_v18, 16  ;;  %v1829_v23 = vshrl.u32 %v1824_v57, 16 }
 0x143   : > { %v1944_v17 = vsel %vm1943_vm7, %v1942_v43, 0  ;;  %v1678_v5 = vmul.u32 %v1674_v11, %v1672_v53  ;;  %vm1683_vm8 = vc.u32 %v1675_v44, %v1679_v63  ;;  %v1813_v58 = vsel %vm1809_vm5, %v1793_v20, %v1796_v49 }
 0x144   : > { %v1815_v29 = vsel %vm1811_vm0, %v1799_v14, %v1814_v31  ;;  %v3152_v54 = vmul.u32 %v1695_v10, %v3036_v25  ;;  %v1820_v37 = vsel %vm1810_vm6, %v1817_v55, %v1819_v39  ;;  %v1828_v21 = vand.u32 65535, %v1824_v57 }
 0x145   : > { %v1940_v62 = vor.u32 8388608, %v1939_v61  ;;  %v3157_v7 = vmul.u32 %v1696_v42, %v3036_v25  ;;  %v3159_v11 = vmul.u32 %v1695_v10, %v1672_v53  ;;  %v3161_v43 = vmul.u32 %v1696_v42, %v1672_v53  ;;  %v929_v25 = vpop.f32.mrf.mxu2 }
 0x146   : > { %v1946_v49 = vand.u32 31, %v1944_v17  ;;  %v1684_v20 = vsel %vm1683_vm8, 1, %v3858_v34  ;;  %v3166_v14 = vsel %vm1810_vm6, %v1813_v58, %v1815_v29  ;;  %v3168_v31 = vmul.u32 %v1829_v23, %v1826_v28 }
 0x147   : > { %3886 = vst [vmem:[#allocation37_spill] sm:$0xff] %v3166_v14  ;;  %v870_v27 = vadd.f32 %v869_v3, %v816_v52  ;;  %v1850_v61 = vand.u32 65535, %v1820_v37  ;;  %v1851_v55 = vshrl.u32 %v1820_v37, 16  ;;  %v3887_v10 = vshll.u32 %v2742_v50, 16 }
 0x148   : > { %v3174_v53 = vadd.s32 %v1679_v63, %v1675_v44  ;;  %v3176_v42 = vmul.u32 %v1828_v21, %v1827_v59  ;;  %v3178_v39 = vshll.u32 %v1940_v62, 8  ;;  %v1062_v60 = vshrl.u32 %v2742_v50, 16 }
 0x149   : > { %vm1067_vm9 = vc.u32 %v2805_v22, %v3887_v10  ;;  %v3181_v58 = vadd.s32 %v1684_v20, %v1678_v5  ;;  %v3185_v52 = vsub.s32 32, %v1946_v49  ;;  %v1081_v29 = vshll.u32 %v2757_v26, 16  ;;  %v975_v20 = vpop.f32.mrf.mxu3 }
 0x14a   : > { %3888 = vst [vmem:[#allocation38_spill] sm:$0xff] %v3178_v39  ;;  %v3188_v37 = vmul.u32 %v1828_v21, %v1826_v28  ;;  %v930_v63 = vadd.f32 %v929_v25, %v870_v27  ;;  %v1068_v44 = vsel %vm1067_vm9, 1, %v3858_v34  ;;  %v3192_v62 = vmul.u32 %v1829_v23, %v1827_v59 }
 0x14b   : > { %v3194_v10 = vmul.u32 %v1850_v61, %v1826_v28  ;;  %v3196_v50 = vmul.u32 %v1851_v55, %v1826_v28  ;;  %v3198_v5 = vmul.u32 %v1850_v61, %v1827_v59  ;;  %v3201_v57 = vmul.u32 %v1851_v55, %v1827_v59 }
 0x14c   : > { %v3203_v21 = vshrl.u32 %v1944_v17, 5  ;;  %v3206_v22 = vand.u32 65535, %v3178_v39  ;;  %v1953_v27 = vshrl.u32 %v3852_v38, %v3185_v52  ;;  %v1956_v23 = vshrl.u32 %v3871_v9, %v3185_v52 }
 0x14d   : > { %3889 = vst [vmem:[#allocation39_spill] sm:$0xff] %v3194_v10  ;;  %v1070_v28 = vadd.s32 %v1068_v44, %v2809_v0  ;;  %vm1085_vm10 = vc.u32 %v2754_v24, %v1081_v29  ;;  %v3893_v61 = vshll.u32 %v3168_v31, 16  ;;  %v1949_v17 = vshll.u32 %v3857_v6, %v1946_v49 }
 0x14e   : > { %3890 = vst [vmem:[#allocation40_spill] sm:$0xff] %v3198_v5  ;;  %v3223_v55 = vshrl.u32 %v3178_v39, 16  ;;  %v3225_v25 = vadd.f32 %v975_v20, %v930_v63  ;;  %v1950_v3 = vshrl.u32 %v3873_v8, %v3185_v52  ;;  %v1952_v0 = vshll.u32 %v3873_v8, %v1946_v49 }
 0x14f   : > { %3891 = vst [vmem:[#allocation41_spill] sm:$0xff] %v3201_v57  ;;  %vm3217_vm11 = vc.u32 %v3188_v37, %v3893_v61  ;;  %v1955_v44 = vshll.u32 %v3852_v38, %v1946_v49  ;;  %v1959_v61 = vshrl.u32 %v3870_v2, %v3185_v52  ;;  %v1962_v14 = vshrl.u32 %v3868_v36, %v3185_v52 }
 0x150   : > { %3892 = vst [vmem:[#allocation42_spill] sm:$0xff] %v3203_v21  ;;  %v1083_v18 = vshll.u32 %v2763_v41, 16  ;;  %v1086_v39 = vsel %vm1085_vm10, 1, %v3858_v34  ;;  %v1087_v63 = vadd.s32 %v1081_v29, %v2754_v24  ;;  %v3238_v20 = vor.u32 %v1953_v27, %v1952_v0 }
 0x151   : > { %v3240_v4 = vor.u32 %v1956_v23, %v1955_v44  ;;  %v3896_v8 = vshrl.u32 %v2691_v46, 16  ;;  %v1088_v38 = vadd.s32 %v1086_v39, %v2765_v13  ;;  %v3248_v5 = vsel %vm3217_vm11, 1, %v3858_v34 }
 0x152   : > { %v1958_v36 = vshll.u32 %v3871_v9, %v1946_v49  ;;  %v1961_v10 = vshll.u32 %v3870_v2, %v1946_v49  ;;  %vm1089_vm12 = vc.u32 %v1087_v63, %v1083_v18  ;;  %v3252_v24 = vor.u32 %v1950_v3, %v1949_v17 }
 0x153   : > { %v1071_v57 = vadd.s32 %v1070_v28, %v3896_v8  ;;  %vm1964_vm13 = vcmp.lt.s32.totalorder %v3203_v21, 1  ;;  %vm1966_vm14 = vcmp.lt.s32.totalorder %v3203_v21, 3  ;;  %v1090_v46 = vsel %vm1089_vm12, 1, %v3858_v34 }
 0x154   : > { %v1960_v29 = vor.u32 %v1959_v61, %v1958_v36  ;;  %v1963_v13 = vor.u32 %v1962_v14, %v1961_v10  ;;  %v1082_v39 = vshrl.u32 %v2757_v26, 16  ;;  %v1092_v27 = vadd.s32 %v1090_v46, %v1088_v38 }
 0x155   : > { %vm1967_vm15 = vcmp.lt.s32.totalorder %v3203_v21, 4  ;;  %v1976_v2 = vsel %vm1964_vm13, %v3238_v20, %v3240_v4  ;;  %v3263_v9 = vadd.s32 %v1071_v57, %v1062_v60  ;;  %v1236_v49 = vshll.u32 %v2852_v16, 16 }
 0x156   : > { %v1084_v3 = vshrl.u32 %v2763_v41, 16  ;;  %v3267_v23 = vadd.s32 %v1087_v63, %v1083_v18  ;;  %v1093_v28 = vadd.s32 %v1092_v27, %v1082_v39  ;;  %v3897_v14 = vshll.u32 %v2829_v48, 16 }
 0x157   : > { %v1238_v10 = vshll.u32 %v2864_v56, 16  ;;  %vm1240_vm2 = vc.u32 %v2837_v12, %v1236_v49  ;;  %v1242_v57 = vadd.s32 %v1236_v49, %v2837_v12  ;;  %v1215_v59 = vshrl.u32 %v2777_v35, 16  ;;  %v3900_v49 = vld [vmem:[#allocation20_spill] sm:$0xff] }
 0x158   : > { %vm1222_vm1 = vc.u32 %v2869_v51, %v3897_v14  ;;  %v1094_v60 = vadd.s32 %v1093_v28, %v1084_v3  ;;  %v1241_v18 = vsel %vm1240_vm2, 1, %v3858_v34  ;;  %v1977_v17 = vsel %vm1967_vm15, %v1963_v13, 1326507024  ;;  %v3901_v28 = vld [vmem:[#allocation17_spill] sm:$0xff] }
 0x159   : > { %v1223_v26 = vsel %vm1222_vm1, 1, %v3858_v34  ;;  %vm1097_vm3 = vc.u32 %v3263_v9, %v3267_v23  ;;  %v1243_v51 = vadd.s32 %v1241_v18, %v2867_v40  ;;  %vm1244_vm4 = vc.u32 %v1242_v57, %v1238_v10  ;;  %v3905_v18 = vld [vmem:[#allocation22_spill] sm:$0xff] }
 0x15a   : > { %v1225_v41 = vadd.s32 %v1223_v26, %v2871_v47  ;;  %vm1965_vm5 = vcmp.lt.s32.totalorder %v3203_v21, 2  ;;  %v1098_v0 = vadd.s32 1, %v1094_v60  ;;  %v1217_v12 = vshrl.u32 %v2829_v48, 16  ;;  %v3898_v48 = vld [vmem:[#allocation5_spill] sm:$0xff]  ;;  %v3903_v26 = vld [vmem:[#allocation23_spill] sm:$0xff] }
 0x15b   : > { %v1245_v35 = vsel %vm1244_vm4, 1, %v3858_v34  ;;  %v1973_v47 = vsel %vm1967_vm15, %v1960_v29, 920167782  ;;  %v1237_v61 = vshrl.u32 %v2852_v16, 16  ;;  %v1391_v8 = vshll.u32 %v2959_v19, 16 }
 0x15c   : > { %v1226_v44 = vadd.s32 %v1225_v41, %v1215_v59  ;;  %v1247_v63 = vadd.s32 %v1245_v35, %v1243_v51  ;;  %v1978_v40 = vsel %vm1966_vm14, %v1960_v29, %v1977_v17  ;;  %v1099_v38 = vsel %vm1097_vm3, %v1098_v0, %v1094_v60  ;;  %v3904_v29 = vld [vmem:[#allocation21_spill] sm:$0xff]  ;;  %v3906_v51 = vld [vmem:[#allocation14_spill] sm:$0xff] }
 0x15d   : > { %v1239_v46 = vshrl.u32 %v2864_v56, 16  ;;  %v3899_v13 = vmul.u32 %v2629_v15, %v3898_v48  ;;  %vm1395_vm0 = vc.u32 %v3900_v49, %v1391_v8  ;;  %v1397_v16 = vadd.s32 %v1391_v8, %v3900_v49 }
 0x15e   : > { %v3293_v36 = vadd.s32 %v1226_v44, %v1217_v12  ;;  %v1248_v27 = vadd.s32 %v1247_v63, %v1237_v61  ;;  %v3301_v3 = vadd.s32 %v1242_v57, %v1238_v10  ;;  %v3902_v14 = vshll.u32 %v3901_v28, 16  ;;  %v3907_v57 = vld [vmem:[#allocation24_spill] sm:$0xff] }
 0x15f   : > { %v1100_v39 = vadd.s32 %v1099_v38, %v3899_v13  ;;  %v1393_v60 = vshll.u32 %v3904_v29, 16  ;;  %v1396_v59 = vsel %vm1395_vm0, 1, %v3858_v34  ;;  %v1370_v10 = vshrl.u32 %v3906_v51, 16 }
 0x160   : > { %vm1377_vm6 = vc.u32 %v3903_v26, %v3902_v14  ;;  %v1249_v41 = vadd.s32 %v1248_v27, %v1239_v46  ;;  %v1398_v17 = vadd.s32 %v1396_v59, %v3905_v18  ;;  %vm1252_vm7 = vc.u32 %v3293_v36, %v3301_v3  ;;  %v3908_v14 = vld [vmem:[#allocation6_spill] sm:$0xff] }
 0x161   : > { %v1101_v56 = vadd.s32 536870912, %v1100_v39  ;;  %v1378_v15 = vsel %vm1377_vm6, 1, %v3858_v34  ;;  %vm1399_vm8 = vc.u32 %v1397_v16, %v1393_v60  ;;  %v1972_v12 = vsel %vm1964_vm13, %v3252_v24, %v3238_v20  ;;  %v3909_v26 = vld [vmem:[#allocation10_spill] sm:$0xff] }
 0x162   : > { %v1380_v0 = vadd.s32 %v1378_v15, %v3907_v57  ;;  %v1253_v35 = vadd.s32 1, %v1249_v41  ;;  %v1400_v61 = vsel %vm1399_vm8, 1, %v3858_v34  ;;  %v1372_v63 = vshrl.u32 %v3901_v28, 16 }
 0x163   : > { %v1102_v44 = vshrl.u32 %v1101_v56, 30  ;;  %v1392_v38 = vshrl.u32 %v2959_v19, 16  ;;  %v1402_v46 = vadd.s32 %v1400_v61, %v1398_v17  ;;  %v1974_v48 = vsel %vm1966_vm14, %v3240_v4, %v1973_v47 }
 0x164   : > { %v1381_v8 = vadd.s32 %v1380_v0, %v1370_v10  ;;  %v1979_v13 = vsel %vm1965_vm5, %v1976_v2, %v1978_v40  ;;  %v1254_v49 = vsel %vm1252_vm7, %v1253_v35, %v1249_v41  ;;  %v3910_v59 = vmul.u32 %v3908_v14, %v3909_v26  ;;  %v3911_v40 = vld [vmem:[#allocation2_spill] sm:$0xff] }
 0x165   : > { %v1103_v27 = vshll.u32 %v1102_v44, 30  ;;  %v1394_v28 = vshrl.u32 %v3904_v29, 16  ;;  %v1403_v18 = vadd.s32 %v1402_v46, %v1392_v38  ;;  %v1948_v19 = vshrl.u32 %v3857_v6, %v3185_v52 }
 0x166   : > { %v1255_v56 = vadd.s32 %v1254_v49, %v3910_v59  ;;  %v3329_v15 = vadd.s32 %v1381_v8, %v1372_v63  ;;  %v1969_v47 = vsel %vm1967_vm15, %v3240_v4, 2102212464  ;;  %v3337_v2 = vadd.s32 %v1397_v16, %v1393_v60 }
 0x167   : > { %v1104_v17 = vsub.s32 %v1100_v39, %v1103_v27  ;;  %vm1004_vm9 = vcmp.lt.s32.totalorder %v3911_v40, 0  ;;  %v3342_v41 = vsel %vm1965_vm5, %v1972_v12, %v1974_v48  ;;  %v1983_v51 = vand.u32 65535, %v1979_v13 }
 0x168   : > { %v1256_v10 = vadd.s32 536870912, %v1255_v56  ;;  %v1404_v29 = vadd.s32 %v1403_v18, %v1394_v28  ;;  %v1984_v57 = vshrl.u32 %v1979_v13, 16  ;;  %vm1407_vm11 = vc.u32 %v3329_v15, %v3337_v2  ;;  %v3918_v13 = vld [vmem:[#allocation12_spill] sm:$0xff] }
 0x169   : > { %vm1105_vm10 = vcmp.lt.s32.totalorder %v1104_v17, 0  ;;  %v1106_v0 = vsub.s32 0, %v1104_v17  ;;  %v3912_v6 = vshll.u32 %v3168_v31, 16  ;;  %v3353_v52 = vadd.s32 %v3248_v5, %v3192_v62  ;;  %v3921_v28 = vld [vmem:[#allocation28_spill] sm:$0xff] }
 0x16a   : > { %v3355_v39 = vshrl.u32 %v1256_v10, 30  ;;  %v1408_v16 = vadd.s32 1, %v1404_v29  ;;  %v3360_v60 = vsel %vm1964_vm13, %v1948_v19, %v3252_v24  ;;  %v2005_v12 = vand.u32 65535, %v3342_v41 }
 0x16b   : > { %v3349_v4 = vadd.s32 %v3912_v6, %v3188_v37  ;;  %3913 = vst [vmem:[#allocation5_spill] sm:$0xff] %v3360_v60  ;;  %v3826_v35 = vshrl.u32 %v3342_v41, 16  ;;  %v1107_v61 = vsel %vm1105_vm10, %v1106_v0, %v1104_v17  ;;  %v3367_v37 = vsel %vm1966_vm14, %v3238_v20, %v1969_v47  ;;  %v3919_v20 = vld [vmem:[#allocation15_spill] sm:$0xff] }
 0x16c   : > { %3914 = vst [vmem:[#allocation20_spill] sm:$0xff] %v3367_v37  ;;  %v3915_v62 = vand.u32 2147483647, %v3911_v40  ;;  %v1108_v63 = vclz %v1107_v61  ;;  %v1258_v24 = vshll.u32 %v3355_v39, 30  ;;  %v1409_v8 = vsel %vm1407_vm11, %v1408_v16, %v1404_v29  ;;  %v3922_v16 = vld [vmem:[#allocation30_spill] sm:$0xff] }
 0x16d   : > { %v3377_v38 = vmul.u32 %v1983_v51, %v3206_v22  ;;  %v3380_v46 = vmul.u32 %v1984_v57, %v3206_v22  ;;  %v1126_v48 = vsub.s32 4, %v1102_v44  ;;  %v3920_v27 = vmul.u32 %v3918_v13, %v3919_v20 }
 0x16e   : > { %vm3371_vm12 = vcmp.le.f32.partialorder %v3915_v62, 0.7853982  ;;  %v3386_v14 = vmul.u32 %v1983_v51, %v3223_v55  ;;  %v2165_v26 = vadd.s32 4294967294, %v1108_v63  ;;  %v1259_v59 = vsub.s32 %v1255_v56, %v1258_v24  ;;  %v3924_v24 = vld [vmem:[#allocation27_spill] sm:$0xff] }
 0x16f   : > { %v1410_v49 = vadd.s32 %v1409_v8, %v3920_v27  ;;  %v1546_v18 = vshll.u32 %v3921_v28, 16  ;;  %v3390_v19 = vmul.u32 %v1984_v57, %v3223_v55  ;;  %v3393_v47 = vmul.u32 %v2005_v12, %v3206_v22 }
 0x170   : > { %v3398_v10 = vmul.u32 %v3826_v35, %v3206_v22  ;;  %v1096_v51 = vadd.s32 %v3267_v23, %v3263_v9  ;;  %vm2166_vm13 = vcmp.lt.s32.totalorder %v2165_v26, 0  ;;  %vm1260_vm14 = vcmp.lt.s32.totalorder %v1259_v59, 0  ;;  %v3926_v9 = vld [vmem:[#allocation3_spill] sm:$0xff] }
 0x171   : > { %v1411_v29 = vadd.s32 536870912, %v1410_v49  ;;  %v1261_v56 = vsub.s32 0, %v1259_v59  ;;  %v1111_v0 = vsel %vm2166_vm13, 0, %v2165_v26  ;;  %v1127_v57 = vsel %vm1004_vm9, %v1126_v48, %v1102_v44  ;;  %v820_v44 = vpop.f32.mrf.mxu0 }
 0x172   : > { %v3923_v61 = vshll.u32 %v3922_v16, 16  ;;  %v1112_v62 = vsub.s32 32, %v1111_v0  ;;  %v1116_v22 = vsub.s32 4294967266, %v1111_v0  ;;  %vm1550_vm1 = vc.u32 %v3924_v24, %v1546_v18 }
 0x173   : > { %v3404_v6 = vshrl.u32 %v1411_v29, 30  ;;  %v1262_v63 = vsel %vm1260_vm14, %v1261_v56, %v1259_v59  ;;  %v3412_v23 = vmul.u32 %v2005_v12, %v3223_v55  ;;  %v1113_v48 = vshll.u32 %v1104_v17, %v1111_v0  ;;  %v3927_v0 = vld [vmem:[#allocation29_spill] sm:$0xff] }
 0x174   : > { %vm1532_vm15 = vc.u32 %v3118_v45, %v3923_v61  ;;  %v1263_v8 = vclz %v1262_v63  ;;  %v1114_v20 = vshrl.u32 %v1096_v51, %v1112_v62  ;;  %v1117_v27 = vadd.s32 127, %v1116_v22 }
 0x175   : > { %3925 = vst [vmem:[#allocation17_spill] sm:$0xff] %v3412_v23  ;;  %v1413_v13 = vshll.u32 %v3404_v6, 30  ;;  %v1129_v45 = vsel %vm3371_vm12, 0, %v1127_v57  ;;  %v1533_v29 = vsel %vm1532_vm15, 1, %v3858_v34  ;;  %v1551_v56 = vsel %vm1550_vm1, 1, %v3858_v34 }
 0x176   : > { %v2168_v26 = vadd.s32 4294967294, %v1263_v8  ;;  %v1115_v61 = vor.u32 %v1114_v20, %v1113_v48  ;;  %v1118_v35 = vshll.u32 %v1117_v27, 23  ;;  %v1552_v63 = vadd.s32 %v1546_v18, %v3924_v24  ;;  %v3928_v18 = vld [vmem:[#allocation31_spill] sm:$0xff] }
 0x177   : > { %v3420_v12 = vsub.s32 %v1410_v49, %v1413_v13  ;;  %vm1159_vm2 = vcmp.lt.s32.totalorder %v3926_v9, 0  ;;  %v1251_v17 = vadd.s32 %v3301_v3, %v3293_v36  ;;  %v1525_v51 = vshrl.u32 %v2994_v1, 16 }
 0x178   : > { %vm2169_vm3 = vcmp.lt.s32.totalorder %v2168_v26, 0  ;;  %v1548_v57 = vshll.u32 %v3927_v0, 16  ;;  %v1119_v62 = vor.u32 4788187, %v1118_v35  ;;  %v1146_v22 = vadd.s32 3, %v1129_v45 }
 0x179   : > { %v1266_v8 = vsel %vm2169_vm3, 0, %v2168_v26  ;;  %v1535_v48 = vadd.s32 %v1533_v29, %v3120_v33  ;;  %vm1415_vm4 = vcmp.lt.s32.totalorder %v3420_v12, 0  ;;  %v1553_v24 = vadd.s32 %v1551_v56, %v3928_v18 }
 0x17a   : > { %v1267_v20 = vsub.s32 32, %v1266_v8  ;;  %v1271_v49 = vsub.s32 4294967266, %v1266_v8  ;;  %v1120_v13 = vand.u32 2147483647, %v1119_v62  ;;  %v1122_v27 = vcvt.s32.f32 %v1115_v61 }
 0x17b   : > { %v3929_v36 = vand.u32 2147483647, %v3926_v9  ;;  %v1416_v1 = vsub.s32 0, %v3420_v12  ;;  %vm1554_vm6 = vc.u32 %v1552_v63, %v1548_v57  ;;  %v1268_v35 = vshll.u32 %v1259_v59, %v1266_v8 }
 0x17c   : > { %v1269_v45 = vshrl.u32 %v1251_v17, %v1267_v20  ;;  %v1272_v33 = vadd.s32 127, %v1271_v49  ;;  %v1281_v26 = vsub.s32 4, %v3355_v39  ;;  %v1123_v29 = vmul.f32 %v1122_v27, %v1120_v13  ;;  %v3932_v13 = vld [vmem:[#allocation7_spill] sm:$0xff] }
 0x17d   : > { %vm3433_vm0 = vcmp.le.f32.partialorder %v3929_v36, 0.7853982  ;;  %v1417_v56 = vsel %vm1415_vm4, %v1416_v1, %v3420_v12  ;;  %v1536_v62 = vadd.s32 %v1535_v48, %v1525_v51  ;;  %v1555_v61 = vsel %vm1554_vm6, 1, %v3858_v34  ;;  %v875_v1 = vpop.f32.mrf.mxu1 }
 0x17e   : > { %v1270_v18 = vor.u32 %v1269_v45, %v1268_v35  ;;  %v1273_v36 = vshll.u32 %v1272_v33, 23  ;;  %v1418_v21 = vclz %v1417_v56  ;;  %v1527_v60 = vshrl.u32 %v3922_v16, 16 }
 0x17f   : > { %v1124_v37 = vxor.u32 2147483648, %v1123_v29  ;;  %v1547_v23 = vshrl.u32 %v3921_v28, 16  ;;  %v1549_v59 = vshrl.u32 %v3927_v0, 16  ;;  %v1557_v17 = vadd.s32 %v1555_v61, %v1553_v24  ;;  %v3933_v24 = vld [vmem:[#allocation4_spill] sm:$0xff] }
 0x180   : > { %v3444_v8 = vand.u32 3, %v1146_v22  ;;  %v1274_v20 = vor.u32 4788187, %v1273_v36  ;;  %v1406_v49 = vadd.s32 %v3337_v2, %v3329_v15  ;;  %v2171_v51 = vadd.s32 4294967294, %v1418_v21  ;;  %v825_v36 = vpop.f32.mrf.mxu0 }
 0x181   : > { %v1125_v48 = vsel %vm1004_vm9, %v1124_v37, %v1123_v29  ;;  %v821_v27 = vadd.f32 %v820_v44, %v3932_v13  ;;  %v1282_v28 = vsel %vm1159_vm2, %v1281_v26, %v3355_v39  ;;  %v3454_v16 = vadd.s32 %v1536_v62, %v1527_v60  ;;  %v933_v26 = vpop.f32.mrf.mxu2 }
 0x182   : > { %v3459_v0 = vsel %vm3371_vm12, %v3911_v40, %v1125_v48  ;;  %v1275_v22 = vand.u32 2147483647, %v1274_v20  ;;  %v1277_v15 = vcvt.s32.f32 %v1270_v18  ;;  %vm2172_vm7 = vcmp.lt.s32.totalorder %v2171_v51, 0 }
 0x183   : > { %v1130_v21 = vmul.f32 %v3459_v0, %v3459_v0  ;;  %v1421_v2 = vsel %vm2172_vm7, 0, %v2171_v51  ;;  %v3463_v37 = vadd.s32 %v1552_v63, %v1548_v57  ;;  %v1558_v44 = vadd.s32 %v1557_v17, %v1547_v23 }
 0x184   : > { %vm1314_vm8 = vcmp.lt.s32.totalorder %v3933_v24, 0  ;;  %v1278_v39 = vmul.f32 %v1277_v15, %v1275_v22  ;;  %v1284_v60 = vsel %vm3433_vm0, 0, %v1282_v28  ;;  %v1422_v35 = vsub.s32 32, %v1421_v2  ;;  %v3937_v15 = vld [vmem:[#allocation11_spill] sm:$0xff] }
 0x185   : > { %v1426_v5 = vsub.s32 4294967266, %v1421_v2  ;;  %v1131_v45 = vmul.f32 -0.001358992, %v1130_v21  ;;  %v1138_v33 = vmul.f32 -0.00019511016, %v1130_v21  ;;  %v1559_v29 = vadd.s32 %v1558_v44, %v1549_v59 }
 0x186   : > { %vm1562_vm9 = vc.u32 %v3454_v16, %v3463_v37  ;;  %v1279_v56 = vxor.u32 2147483648, %v1278_v39  ;;  %v1423_v63 = vshll.u32 %v3420_v12, %v1421_v2  ;;  %v1424_v57 = vshrl.u32 %v1406_v49, %v1422_v35  ;;  %v3939_v35 = vld [vmem:[#allocation25_spill] sm:$0xff] }
 0x187   : > { %v1427_v23 = vadd.s32 127, %v1426_v5  ;;  %v1132_v62 = vadd.f32 0.041655596, %v1131_v45  ;;  %v1139_v61 = vadd.f32 0.008332121, %v1138_v33  ;;  %v876_v18 = vadd.f32 %v875_v1, %v821_v27 }
 0x188   : > { %v3934_v17 = vand.u32 2147483647, %v3933_v24  ;;  %v1563_v51 = vadd.s32 1, %v1559_v29  ;;  %v1280_v59 = vsel %vm1159_vm2, %v1279_v56, %v1278_v39  ;;  %v1425_v48 = vor.u32 %v1424_v57, %v1423_v63  ;;  %v3938_v39 = vld [vmem:[#allocation19_spill] sm:$0xff]  ;;  %v881_v57 = vpop.f32.mrf.mxu1 }
 0x189   : > { %v1428_v13 = vshll.u32 %v1427_v23, 23  ;;  %v1436_v12 = vsub.s32 4, %v3404_v6  ;;  %v1133_v49 = vmul.f32 %v1132_v62, %v1130_v21  ;;  %v1140_v28 = vmul.f32 %v1139_v61, %v1130_v21 }
 0x18a   : > { %vm3473_vm10 = vcmp.le.f32.partialorder %v3934_v17, 0.7853982  ;;  %v3483_v27 = vsel %vm3433_vm0, %v3926_v9, %v1280_v59  ;;  %v1564_v1 = vsel %vm1562_vm9, %v1563_v51, %v1559_v29  ;;  %v826_v2 = vadd.f32 %v825_v36, %v3937_v15 }
 0x18b   : > { %v1285_v22 = vmul.f32 %v3483_v27, %v3483_v27  ;;  %v1429_v44 = vor.u32 4788187, %v1428_v13  ;;  %v3940_v5 = vmul.u32 %v3938_v39, %v3939_v35  ;;  %v1134_v33 = vadd.f32 -0.4999988, %v1133_v49 }
 0x18c   : > { %v1141_v56 = vadd.f32 -0.16666654, %v1140_v28  ;;  %v934_v63 = vadd.f32 %v933_v26, %v876_v18  ;;  %v1301_v3 = vadd.s32 3, %v1284_v60  ;;  %vm1149_vm11 = vcmp.eq.s32.totalorder %v3444_v8, 0  ;;  %v979_v60 = vpop.f32.mrf.mxu3 }
 0x18d   : > { %v1565_v45 = vadd.s32 %v1564_v1, %v3940_v5  ;;  %vm1152_vm12 = vcmp.eq.s32.totalorder %v3444_v8, 2  ;;  %v1286_v29 = vmul.f32 -0.001358992, %v1285_v22  ;;  %v1293_v23 = vmul.f32 -0.00019511016, %v1285_v22 }
 0x18e   : > { %v1430_v62 = vand.u32 2147483647, %v1429_v44  ;;  %v1432_v61 = vcvt.s32.f32 %v1425_v48  ;;  %v1135_v17 = vmul.f32 %v1134_v33, %v1130_v21  ;;  %v1142_v36 = vmul.f32 %v1141_v56, %v1130_v21  ;;  %v937_v48 = vpop.f32.mrf.mxu2 }
 0x18f   : > { %vm1148_vm13 = vcmp.lt.s32.totalorder %v3444_v8, 2  ;;  %v1437_v51 = vsel %vm1314_vm8, %v1436_v12, %v3404_v6  ;;  %v1566_v59 = vadd.s32 536870912, %v1565_v45  ;;  %vm1145_vm14 = vweird.f32 %v3911_v40 }
 0x190   : > { %v1287_v26 = vadd.f32 0.041655596, %v1286_v29  ;;  %v1294_v18 = vadd.f32 0.008332121, %v1293_v23  ;;  %v882_v13 = vadd.f32 %v881_v57, %v826_v2  ;;  %v1433_v49 = vmul.f32 %v1432_v61, %v1430_v62 }
 0x191   : > { %v1136_v28 = vadd.f32 1.0, %v1135_v17  ;;  %v1143_v1 = vadd.f32 1.0, %v1142_v36  ;;  %v1302_v15 = vand.u32 3, %v1301_v3  ;;  %v3501_v44 = vshrl.u32 %v1566_v59, 30 }
 0x192   : > { %v1288_v21 = vmul.f32 %v1287_v26, %v1285_v22  ;;  %v1295_v39 = vmul.f32 %v1294_v18, %v1285_v22  ;;  %v1434_v35 = vxor.u32 2147483648, %v1433_v49  ;;  %v1439_v6 = vsel %vm3473_vm10, 0, %v1437_v51 }
 0x193   : > { %v1144_v12 = vmul.f32 %v1143_v1, %v3459_v0  ;;  %v1153_v5 = vxor.u32 2147483648, %v1136_v28  ;;  %v980_v33 = vadd.f32 %v979_v60, %v934_v63  ;;  %v1568_v56 = vshll.u32 %v3501_v44, 30 }
 0x194   : > { %v1289_v2 = vadd.f32 -0.4999988, %v1288_v21  ;;  %v1296_v57 = vadd.f32 -0.16666654, %v1295_v39  ;;  %v938_v29 = vadd.f32 %v937_v48, %v882_v13  ;;  %v1435_v3 = vsel %vm1314_vm8, %v1434_v35, %v1433_v49  ;;  %v983_v21 = vpop.f32.mrf.mxu3 }
 0x195   : > { %v1150_v23 = vxor.u32 2147483648, %v1144_v12  ;;  %v3512_v62 = vsel %vm3473_vm10, %v3933_v24, %v1435_v3  ;;  %v1456_v61 = vadd.s32 3, %v1439_v6  ;;  %v3514_v17 = vsub.s32 %v1565_v45, %v1568_v56 }
 0x196   : > { %v1290_v0 = vmul.f32 %v1289_v2, %v1285_v22  ;;  %v1297_v63 = vmul.f32 %v1296_v57, %v1285_v22  ;;  %vm1303_vm15 = vcmp.lt.s32.totalorder %v1302_v15, 2  ;;  %v1440_v36 = vmul.f32 %v3512_v62, %v3512_v62 }
 0x197   : > { %v3941_v51 = vshll.u32 %v3144_v32, 16  ;;  %v1151_v59 = vsel %vm1149_vm11, %v1136_v28, %v1150_v23  ;;  %v1154_v20 = vsel %vm1152_vm12, %v1153_v5, %v1144_v12  ;;  %vm1300_vm2 = vweird.f32 %v3926_v9 }
 0x198   : > { %vm1570_vm3 = vcmp.lt.s32.totalorder %v3514_v17, 0  ;;  %v1571_v22 = vsub.s32 0, %v3514_v17  ;;  %v1155_v45 = vsel %vm1148_vm13, %v1151_v59, %v1154_v20  ;;  %v1291_v60 = vadd.f32 1.0, %v1290_v0 }
 0x199   : > { %vm1687_vm1 = vc.u32 %v3174_v53, %v3941_v51  ;;  %v1298_v26 = vadd.f32 1.0, %v1297_v63  ;;  %v1441_v18 = vmul.f32 -0.001358992, %v1440_v36  ;;  %v1156_v53 = vsel %vm1145_vm14, nan, %v1155_v45 }
 0x19a   : > { %v1448_v13 = vmul.f32 -0.00019511016, %v1440_v36  ;;  %v1572_v49 = vsel %vm1570_vm3, %v1571_v22, %v3514_v17  ;;  %v1688_v28 = vsel %vm1687_vm1, 1, %v3858_v34  ;;  %v2087_v8 = vmul.f32 %v1156_v53, %v3225_v25 }
 0x19b   : > { %v1299_v1 = vmul.f32 %v1298_v26, %v3483_v27  ;;  %v1308_v48 = vxor.u32 2147483648, %v1291_v60  ;;  %v1442_v39 = vadd.f32 0.041655596, %v1441_v18  ;;  %vm1304_vm4 = vcmp.eq.s32.totalorder %v1302_v15, 0 }
 0x19c   : > { %vm1307_vm0 = vcmp.eq.s32.totalorder %v1302_v15, 2  ;;  %v1449_v35 = vadd.f32 0.008332121, %v1448_v13  ;;  %v1573_v6 = vclz %v1572_v49  ;;  %2094 = vst [vmem:[%s3535_s25] sm:$0xff] %v2087_v8  ;;  %v1457_v5 = vand.u32 3, %v1456_v61 }
 0x19d   : > { %v1305_v40 = vxor.u32 2147483648, %v1299_v1  ;;  %v1443_v12 = vmul.f32 %v1442_v39, %v1440_v36  ;;  %v1690_v56 = vadd.s32 %v1688_v28, %v3181_v58  ;;  %v3545_v2 = vadd.f32 %v983_v21, %v938_v29  ;;  %v3942_v39 = vld [vmem:[#allocation8_spill] sm:$0xff] }
 0x19e   : > { %v1450_v57 = vmul.f32 %v1449_v35, %v1440_v36  ;;  %v2174_v3 = vadd.s32 4294967294, %v1573_v6  ;;  %v1680_v25 = vshrl.u32 %v3101_v30, 16  ;;  %v1309_v23 = vsel %vm1307_vm0, %v1308_v48, %v1299_v1 }
 0x19f   : > { %v1306_v27 = vsel %vm1304_vm4, %v1291_v60, %v1305_v40  ;;  %v1444_v0 = vadd.f32 -0.4999988, %v1443_v12  ;;  %v1701_v63 = vshll.u32 %v3157_v7, 16  ;;  %v1561_v20 = vadd.s32 %v3463_v37, %v3454_v16 }
 0x1a0   : > { %v1310_v51 = vsel %vm1303_vm15, %v1306_v27, %v1309_v23  ;;  %v1451_v59 = vadd.f32 -0.16666654, %v1450_v57  ;;  %vm2175_vm6 = vcmp.lt.s32.totalorder %v2174_v3, 0  ;;  %vm1459_vm7 = vcmp.eq.s32.totalorder %v1457_v5, 0 }
 0x1a1   : > { %v1311_v58 = vsel %vm1300_vm2, nan, %v1310_v51  ;;  %v1445_v29 = vmul.f32 %v1444_v0, %v1440_v36  ;;  %v1576_v61 = vsel %vm2175_vm6, 0, %v2174_v3  ;;  %v1691_v30 = vadd.s32 %v1690_v56, %v1680_v25 }
 0x1a2   : > { %v2088_v22 = vmul.f32 %v1311_v58, %v980_v33  ;;  %v1452_v45 = vmul.f32 %v1451_v59, %v1440_v36  ;;  %vm1458_vm8 = vcmp.lt.s32.totalorder %v1457_v5, 2  ;;  %v1577_v60 = vsub.s32 32, %v1576_v61 }
 0x1a3   : > { %v1703_v15 = vshll.u32 %v3159_v11, 16  ;;  %v1446_v26 = vadd.f32 1.0, %v1445_v29  ;;  %vm1455_vm9 = vweird.f32 %v3933_v24  ;;  %v1581_v18 = vsub.s32 4294967266, %v1576_v61  ;;  %v830_v29 = vpop.f32.mrf.mxu0  ;;  %v3949_v24 = vld [vmem:[#allocation40_spill] sm:$0xff] }
 0x1a4   : > { %vm1705_vm10 = vc.u32 %v3152_v54, %v1701_v63  ;;  %v1707_v9 = vadd.s32 %v1701_v63, %v3152_v54  ;;  %2095 = vst [vmem:[%s3535_s25 + $0x8] sm:$0xff] %v2088_v22  ;;  %v1453_v16 = vadd.f32 1.0, %v1452_v45  ;;  %v1578_v37 = vshll.u32 %v3514_v17, %v1576_v61 }
 0x1a5   : > { %v1579_v53 = vshrl.u32 %v1561_v20, %v1577_v60  ;;  %v1706_v33 = vsel %vm1705_vm10, 1, %v3858_v34  ;;  %v1463_v36 = vxor.u32 2147483648, %v1446_v26  ;;  %v1582_v13 = vadd.s32 127, %v1581_v18 }
 0x1a6   : > { %v1708_v49 = vadd.s32 %v1706_v33, %v3161_v43  ;;  %vm1709_vm11 = vc.u32 %v1707_v9, %v1703_v15  ;;  %v1454_v28 = vmul.f32 %v1453_v16, %v3512_v62  ;;  %v1682_v1 = vshrl.u32 %v3144_v32, 16  ;;  %v3951_v16 = vld [vmem:[#allocation9_spill] sm:$0xff] }
 0x1a7   : > { %v1580_v8 = vor.u32 %v1579_v53, %v1578_v37  ;;  %v1710_v48 = vsel %vm1709_vm11, 1, %v3858_v34  ;;  %vm1462_vm12 = vcmp.eq.s32.totalorder %v1457_v5, 2  ;;  %v1583_v54 = vshll.u32 %v1582_v13, 23  ;;  %v3963_v33 = vld [vmem:[#allocation17_spill] sm:$0xff] }
 0x1a8   : > { %v1702_v21 = vshrl.u32 %v3157_v7, 16  ;;  %v1712_v17 = vadd.s32 %v1710_v48, %v1708_v49  ;;  %vm1469_vm13 = vcmp.lt.s32.totalorder %v3942_v39, 0  ;;  %v3943_v35 = vshll.u32 %v3380_v46, 16 }
 0x1a9   : > { %v1460_v62 = vxor.u32 2147483648, %v1454_v28  ;;  %v1591_v6 = vsub.s32 4, %v3501_v44  ;;  %v3575_v32 = vadd.s32 %v1691_v30, %v1682_v1  ;;  %v1704_v40 = vshrl.u32 %v3159_v11, 16  ;;  %v3947_v30 = vld [vmem:[#allocation39_spill] sm:$0xff] }
 0x1aa   : > { %vm3570_vm14 = vc.u32 %v3377_v38, %v3943_v35  ;;  %v1464_v12 = vsel %vm1462_vm12, %v1463_v36, %v1454_v28  ;;  %v1584_v56 = vor.u32 4788187, %v1583_v54  ;;  %v3578_v7 = vadd.s32 %v1707_v9, %v1703_v15  ;;  %v3956_v36 = vld [vmem:[#allocation34_spill] sm:$0xff]  ;;  %v887_v28 = vpop.f32.mrf.mxu1 }
 0x1ab   : > { %v1713_v57 = vadd.s32 %v1712_v17, %v1702_v21  ;;  %v1461_v3 = vsel %vm1459_vm7, %v1446_v26, %v1460_v62  ;;  %v1587_v25 = vcvt.s32.f32 %v1580_v8  ;;  %v3946_v27 = vshll.u32 %v3176_v42, 16 }
 0x1ac   : > { %v1856_v23 = vshll.u32 %v3196_v50, 16  ;;  %v1465_v0 = vsel %vm1458_vm8, %v1461_v3, %v1464_v12  ;;  %v1585_v63 = vand.u32 2147483647, %v1584_v56  ;;  %vm1717_vm1 = vc.u32 %v3575_v32, %v3578_v7 }
 0x1ad   : > { %vm1842_vm15 = vc.u32 %v3349_v4, %v3946_v27  ;;  %v1714_v51 = vadd.s32 %v1713_v57, %v1704_v40  ;;  %v1466_v59 = vsel %vm1455_vm9, nan, %v1465_v0  ;;  %v1835_v20 = vshrl.u32 %v3168_v31, 16 }
 0x1ae   : > { %v1843_v11 = vsel %vm1842_vm15, 1, %v3858_v34  ;;  %v2089_v4 = vmul.f32 %v1466_v59, %v3545_v2  ;;  %v1588_v5 = vmul.f32 %v1587_v25, %v1585_v63  ;;  %vm1860_vm2 = vc.u32 %v3947_v30, %v1856_v23  ;;  %v3950_v2 = vld [vmem:[#allocation41_spill] sm:$0xff]  ;;  %v941_v63 = vpop.f32.mrf.mxu2 }
 0x1af   : > { %v1845_v58 = vadd.s32 %v1843_v11, %v3353_v52  ;;  %v1718_v61 = vadd.s32 1, %v1714_v51  ;;  %v3948_v22 = vmov %v3943_v35  ;;  %v1858_v60 = vshll.u32 %v3949_v24, 16 }
 0x1b0   : > { %v1995_v45 = vadd.s32 %v3948_v22, %v3377_v38  ;;  %v1861_v15 = vsel %vm1860_vm2, 1, %v3858_v34  ;;  %v1862_v26 = vadd.s32 %v1856_v23, %v3947_v30  ;;  %2096 = vst [vmem:[%s3535_s25 + $0x10] sm:$0xff] %v2089_v4  ;;  %v1589_v31 = vxor.u32 2147483648, %v1588_v5  ;;  %v3955_v38 = vld [vmem:[#allocation32_spill] sm:$0xff] }
 0x1b1   : > { %v1719_v52 = vsel %vm1717_vm1, %v1718_v61, %v1714_v51  ;;  %v1846_v18 = vadd.s32 %v1845_v58, %v1835_v20  ;;  %v1863_v9 = vadd.s32 %v1861_v15, %v3950_v2  ;;  %v831_v37 = vadd.f32 %v830_v29, %v3951_v16  ;;  %v987_v15 = vpop.f32.mrf.mxu3 }
 0x1b2   : > { %v3952_v53 = vand.u32 2147483647, %v3942_v39  ;;  %v3957_v13 = vmul.u32 %v3955_v38, %v3956_v36  ;;  %vm1864_vm4 = vc.u32 %v1862_v26, %v1858_v60  ;;  %v1590_v8 = vsel %vm1469_vm13, %v1589_v31, %v1588_v5 }
 0x1b3   : > { %v1592_v1 = vsel %vm1469_vm13, %v1591_v6, %v3501_v44  ;;  %v1837_v48 = vshrl.u32 %v3176_v42, 16  ;;  %v1865_v54 = vsel %vm1864_vm4, 1, %v3858_v34  ;;  %v1857_v35 = vshrl.u32 %v3196_v50, 16 }
 0x1b4   : > { %vm3606_vm3 = vcmp.le.f32.partialorder %v3952_v53, 0.7853982  ;;  %v1720_v49 = vadd.s32 %v1719_v52, %v3957_v13  ;;  %v1867_v62 = vadd.s32 %v1865_v54, %v1863_v9  ;;  %v1994_v40 = vsel %vm3570_vm14, 1, %v3858_v34  ;;  %v3961_v52 = vld [vmem:[#allocation37_spill] sm:$0xff] }
 0x1b5   : > { %v3623_v21 = vsel %vm3606_vm3, %v3942_v39, %v1590_v8  ;;  %v3631_v6 = vadd.s32 %v1846_v18, %v1837_v48  ;;  %v2011_v42 = vshll.u32 %v3398_v10, 16  ;;  %v888_v12 = vadd.f32 %v887_v28, %v831_v37 }
 0x1b6   : > { %v1721_v17 = vadd.s32 536870912, %v1720_v49  ;;  %v1595_v44 = vmul.f32 %v3623_v21, %v3623_v21  ;;  %v1859_v57 = vshrl.u32 %v3949_v24, 16  ;;  %v1868_v3 = vadd.s32 %v1867_v62, %v1857_v35 }
 0x1b7   : > { %v1594_v50 = vsel %vm3606_vm3, 0, %v1592_v1  ;;  %v3639_v43 = vadd.s32 %v1862_v26, %v1858_v60  ;;  %v3958_v23 = vshrl.u32 %v3342_v41, 16  ;;  %v3959_v59 = vshll.u32 %v3386_v14, 16 }
 0x1b8   : > { %v3634_v56 = vshrl.u32 %v1721_v17, 30  ;;  %v1596_v25 = vmul.f32 -0.001358992, %v1595_v44  ;;  %v1603_v27 = vmul.f32 -0.00019511016, %v1595_v44  ;;  %v1869_v11 = vadd.s32 %v1868_v3, %v1859_v57 }
 0x1b9   : > { %v2010_v0 = vmul.u32 %v3958_v23, %v3223_v55  ;;  %vm1997_vm0 = vc.u32 %v1995_v45, %v3959_v59  ;;  %vm1872_vm6 = vc.u32 %v3631_v6, %v3639_v43  ;;  %vm2015_vm7 = vc.u32 %v3393_v47, %v2011_v42 }
 0x1ba   : > { %v1723_v51 = vshll.u32 %v3634_v56, 30  ;;  %v1597_v20 = vadd.f32 0.041655596, %v1596_v25  ;;  %v1604_v58 = vadd.f32 0.008332121, %v1603_v27  ;;  %v1996_v4 = vadd.s32 %v1994_v40, %v3390_v19  ;;  %v3960_v19 = vld [vmem:[#allocation35_spill] sm:$0xff] }
 0x1bb   : > { %v1611_v29 = vadd.s32 3, %v1594_v50  ;;  %v1873_v55 = vadd.s32 1, %v1869_v11  ;;  %v942_v41 = vadd.f32 %v941_v63, %v888_v12  ;;  %v1998_v22 = vsel %vm1997_vm0, 1, %v3858_v34 }
 0x1bc   : > { %v3651_v5 = vsub.s32 %v1720_v49, %v1723_v51  ;;  %v1598_v61 = vmul.f32 %v1597_v20, %v1595_v44  ;;  %v1605_v30 = vmul.f32 %v1604_v58, %v1595_v44  ;;  %v2016_v60 = vsel %vm2015_vm7, 1, %v3858_v34 }
 0x1bd   : > { %v1874_v24 = vsel %vm1872_vm6, %v1873_v55, %v1869_v11  ;;  %v3962_v18 = vmul.u32 %v3960_v19, %v3961_v52  ;;  %v2017_v9 = vadd.s32 %v2011_v42, %v3393_v47  ;;  %v1612_v16 = vand.u32 3, %v1611_v29 }
 0x1be   : > { %vm1725_vm8 = vcmp.lt.s32.totalorder %v3651_v5, 0  ;;  %v1726_v45 = vsub.s32 0, %v3651_v5  ;;  %v1599_v26 = vadd.f32 -0.4999988, %v1598_v61  ;;  %v1606_v31 = vadd.f32 -0.16666654, %v1605_v30 }
 0x1bf   : > { %v1875_v2 = vadd.s32 %v1874_v24, %v3962_v18  ;;  %v2000_v53 = vadd.s32 %v1998_v22, %v1996_v4  ;;  %v2013_v38 = vshll.u32 %v3963_v33, 16  ;;  %v988_v8 = vadd.f32 %v987_v15, %v942_v41 }
 0x1c0   : > { %v1727_v37 = vsel %vm1725_vm8, %v1726_v45, %v3651_v5  ;;  %v1600_v36 = vmul.f32 %v1599_v26, %v1595_v44  ;;  %v1607_v13 = vmul.f32 %v1606_v31, %v1595_v44  ;;  %vm1610_vm9 = vweird.f32 %v3942_v39  ;;  %v3967_v31 = vld [vmem:[#allocation38_spill] sm:$0xff] }
 0x1c1   : > { %v1728_v49 = vclz %v1727_v37  ;;  %v1876_v28 = vadd.s32 536870912, %v1875_v2  ;;  %v1990_v1 = vshrl.u32 %v3380_v46, 16  ;;  %v2018_v48 = vadd.s32 %v2016_v60, %v2010_v0 }
 0x1c2   : > { %vm2019_vm10 = vc.u32 %v2017_v9, %v2013_v38  ;;  %v1601_v54 = vadd.f32 1.0, %v1600_v36  ;;  %v1608_v17 = vadd.f32 1.0, %v1607_v13  ;;  %vm1613_vm11 = vcmp.lt.s32.totalorder %v1612_v16, 2 }
 0x1c3   : > { %v2177_v47 = vadd.s32 4294967294, %v1728_v49  ;;  %v3665_v35 = vshrl.u32 %v1876_v28, 30  ;;  %vm1614_vm12 = vcmp.eq.s32.totalorder %v1612_v16, 0  ;;  %v2001_v62 = vadd.s32 %v2000_v53, %v1990_v1  ;;  %v3968_v28 = vld [vmem:[#allocation13_spill] sm:$0xff] }
 0x1c4   : > { %v2020_v40 = vsel %vm2019_vm10, 1, %v3858_v34  ;;  %v1609_v44 = vmul.f32 %v1608_v17, %v3623_v21  ;;  %v1618_v42 = vxor.u32 2147483648, %v1601_v54  ;;  %vm1617_vm14 = vcmp.eq.s32.totalorder %v1612_v16, 2 }
 0x1c5   : > { %vm2178_vm13 = vcmp.lt.s32.totalorder %v2177_v47, 0  ;;  %v1878_v12 = vshll.u32 %v3665_v35, 30  ;;  %v1992_v57 = vshrl.u32 %v3386_v14, 16  ;;  %v2022_v3 = vadd.s32 %v2020_v40, %v2018_v48 }
 0x1c6   : > { %v1731_v46 = vsel %vm2178_vm13, 0, %v2177_v47  ;;  %v1615_v50 = vxor.u32 2147483648, %v1609_v44  ;;  %v1716_v25 = vadd.s32 %v3578_v7, %v3575_v32  ;;  %v2012_v23 = vshrl.u32 %v3398_v10, 16  ;;  %v3964_v7 = vld [vmem:[#allocation20_spill] sm:$0xff]  ;;  %v3965_v10 = vld [vmem:[#allocation5_spill] sm:$0xff] }
 0x1c7   : > { %v1732_v27 = vsub.s32 32, %v1731_v46  ;;  %v1736_v0 = vsub.s32 4294967266, %v1731_v46  ;;  %v1879_v34 = vsub.s32 %v1875_v2, %v1878_v12  ;;  %v3674_v63 = vadd.s32 %v2001_v62, %v1992_v57  ;;  %v3972_v57 = vld [vmem:[#allocation16_spill] sm:$0xff] }
 0x1c8   : > { %v2014_v21 = vshrl.u32 %v3963_v33, 16  ;;  %v1616_v51 = vsel %vm1614_vm12, %v1601_v54, %v1615_v50  ;;  %v1619_v11 = vsel %vm1617_vm14, %v1618_v42, %v1609_v44  ;;  %v2023_v14 = vadd.s32 %v2022_v3, %v2012_v23  ;;  %v835_v54 = vpop.f32.mrf.mxu0 }
 0x1c9   : > { %v1734_v59 = vshrl.u32 %v1716_v25, %v1732_v27  ;;  %v1620_v20 = vsel %vm1613_vm11, %v1616_v51, %v1619_v11  ;;  %v1733_v58 = vshll.u32 %v3651_v5, %v1731_v46  ;;  %v1737_v32 = vadd.s32 127, %v1736_v0  ;;  %v893_v25 = vpop.f32.mrf.mxu1 }
 0x1ca   : > { %vm1880_vm15 = vcmp.lt.s32.totalorder %v1879_v34, 0  ;;  %v1971_v29 = vsel %vm1965_vm5, %v3965_v10, %v3964_v7  ;;  %v1621_v55 = vsel %vm1610_vm9, nan, %v1620_v20  ;;  %v1881_v41 = vsub.s32 0, %v1879_v34 }
 0x1cb   : > { %v3686_v61 = vadd.s32 %v2017_v9, %v2013_v38  ;;  %v2090_v30 = vmul.f32 %v1621_v55, %v988_v8  ;;  %v1735_v22 = vor.u32 %v1734_v59, %v1733_v58  ;;  %v1738_v45 = vshll.u32 %v1737_v32, 23  ;;  %v945_v58 = vpop.f32.mrf.mxu2 }
 0x1cc   : > { %v2024_v24 = vadd.s32 %v2023_v14, %v2014_v21  ;;  %v1882_v60 = vsel %vm1880_vm15, %v1881_v41, %v1879_v34  ;;  %v2025_v19 = vmul.u32 %v3967_v31, %v1971_v29  ;;  %v1871_v37 = vadd.s32 %v3639_v43, %v3631_v6 }
 0x1cd   : > { %vm2027_vm1 = vc.u32 %v3674_v63, %v3686_v61  ;;  %2097 = vst [vmem:[%s3535_s25 + $0x18] sm:$0xff] %v2090_v30  ;;  %v1739_v5 = vor.u32 4788187, %v1738_v45  ;;  %v1883_v15 = vclz %v1882_v60  ;;  %v1742_v39 = vcvt.s32.f32 %v1735_v22  ;;  %v3973_v45 = vld [vmem:[#allocation18_spill] sm:$0xff] }
 0x1ce   : > { %v2028_v26 = vadd.s32 1, %v2024_v24  ;;  %v1746_v36 = vsub.s32 4, %v3634_v56  ;;  %vm1624_vm2 = vcmp.lt.s32.totalorder %v3968_v28, 0  ;;  %v3969_v8 = vand.u32 2147483647, %v3968_v28 }
 0x1cf   : > { %v1740_v52 = vand.u32 2147483647, %v1739_v5  ;;  %v2180_v18 = vadd.s32 4294967294, %v1883_v15  ;;  %v836_v3 = vadd.f32 %v835_v54, %v3972_v57  ;;  %vm1779_vm0 = vcmp.lt.s32.totalorder %v3973_v45, 0 }
 0x1d0   : > { %v2029_v2 = vsel %vm2027_vm1, %v2028_v26, %v2024_v24  ;;  %vm3698_vm3 = vcmp.le.f32.partialorder %v3969_v8, 0.7853982  ;;  %v1747_v44 = vsel %vm1624_vm2, %v1746_v36, %v3634_v56  ;;  %v3974_v60 = vand.u32 2147483647, %v3973_v45  ;;  %v991_v26 = vpop.f32.mrf.mxu3 }
 0x1d1   : > { %v2030_v9 = vadd.s32 %v2029_v2, %v2025_v19  ;;  %v1743_v16 = vmul.f32 %v1742_v39, %v1740_v52  ;;  %vm2181_vm5 = vcmp.lt.s32.totalorder %v2180_v18, 0  ;;  %v894_v56 = vadd.f32 %v893_v25, %v836_v3 }
 0x1d2   : > { %v1886_v53 = vsel %vm2181_vm5, 0, %v2180_v18  ;;  %vm3715_vm6 = vcmp.le.f32.partialorder %v3974_v60, 0.7853982  ;;  %v1901_v15 = vsub.s32 4, %v3665_v35  ;;  %v2026_v36 = vadd.s32 %v3686_v61, %v3674_v63 }
 0x1d3   : > { %v2031_v33 = vadd.s32 536870912, %v2030_v9  ;;  %v1744_v38 = vxor.u32 2147483648, %v1743_v16  ;;  %v1887_v13 = vsub.s32 32, %v1886_v53  ;;  %v1891_v49 = vsub.s32 4294967266, %v1886_v53 }
 0x1d4   : > { %v1888_v6 = vshll.u32 %v1879_v34, %v1886_v53  ;;  %v1749_v34 = vsel %vm3698_vm3, 0, %v1747_v44  ;;  %v946_v24 = vadd.f32 %v945_v58, %v894_v56  ;;  %vm1765_vm11 = vweird.f32 %v3968_v28 }
 0x1d5   : > { %v3702_v48 = vshrl.u32 %v2031_v33, 30  ;;  %v1745_v17 = vsel %vm1624_vm2, %v1744_v38, %v1743_v16  ;;  %v1889_v43 = vshrl.u32 %v1871_v37, %v1887_v13  ;;  %v1892_v47 = vadd.s32 127, %v1891_v49 }
 0x1d6   : > { %v1748_v62 = vsel %vm3698_vm3, %v3968_v28, %v1745_v17  ;;  %v1766_v29 = vadd.s32 3, %v1749_v34  ;;  %v992_v33 = vadd.f32 %v991_v26, %v946_v24  ;;  %v1902_v38 = vsel %vm1779_vm0, %v1901_v15, %v3665_v35 }
 0x1d7   : > { %v2033_v40 = vshll.u32 %v3702_v48, 30  ;;  %v1750_v42 = vmul.f32 %v1748_v62, %v1748_v62  ;;  %v1890_v12 = vor.u32 %v1889_v43, %v1888_v6  ;;  %v1893_v46 = vshll.u32 %v1892_v47, 23 }
 0x1d8   : > { %v1767_v39 = vand.u32 3, %v1766_v29  ;;  %v1904_v35 = vsel %vm3715_vm6, 0, %v1902_v38  ;;  %v995_v15 = vpop.f32.mrf.mxu3  ;;  %vm1920_vm1 = vweird.f32 %v3973_v45 }
 0x1d9   : > { %v2034_v50 = vsub.s32 %v2030_v9, %v2033_v40  ;;  %v1751_v27 = vmul.f32 -0.001358992, %v1750_v42  ;;  %v1758_v23 = vmul.f32 -0.00019511016, %v1750_v42  ;;  %v1894_v0 = vor.u32 4788187, %v1893_v46  ;;  %v840_v40 = vpop.f32.mrf.mxu0 }
 0x1da   : > { %v1897_v14 = vcvt.s32.f32 %v1890_v12  ;;  %vm1768_vm8 = vcmp.lt.s32.totalorder %v1767_v39, 2  ;;  %vm1769_vm9 = vcmp.eq.s32.totalorder %v1767_v39, 0  ;;  %vm1772_vm10 = vcmp.eq.s32.totalorder %v1767_v39, 2 }
 0x1db   : > { %vm2035_vm4 = vcmp.lt.s32.totalorder %v2034_v50, 0  ;;  %v2036_v21 = vsub.s32 0, %v2034_v50  ;;  %v1752_v51 = vadd.f32 0.041655596, %v1751_v27  ;;  %v1759_v11 = vadd.f32 0.008332121, %v1758_v23 }
 0x1dc   : > { %v1895_v59 = vand.u32 2147483647, %v1894_v0  ;;  %v899_v0 = vpop.f32.mrf.mxu1 }
 0x1dd   : > { %v2037_v20 = vsel %vm2035_vm4, %v2036_v21, %v2034_v50  ;;  %v1753_v32 = vmul.f32 %v1752_v51, %v1750_v42  ;;  %v1760_v7 = vmul.f32 %v1759_v11, %v1750_v42  ;;  %v1921_v11 = vadd.s32 3, %v1904_v35 }
 0x1de   : > { %v1898_v10 = vmul.f32 %v1897_v14, %v1895_v59  ;;  %v2038_v4 = vclz %v2037_v20 }
 0x1df   : > { %v1754_v55 = vadd.f32 -0.4999988, %v1753_v32  ;;  %v1761_v41 = vadd.f32 -0.16666654, %v1760_v7  ;;  %v949_v7 = vpop.f32.mrf.mxu2 }
 0x1e0   : > { %v1899_v30 = vxor.u32 2147483648, %v1898_v10  ;;  %v2183_v22 = vadd.s32 4294967294, %v2038_v4  ;;  %v1922_v4 = vand.u32 3, %v1921_v11 }
 0x1e1   : > { %v1755_v31 = vmul.f32 %v1754_v55, %v1750_v42  ;;  %v1762_v19 = vmul.f32 %v1761_v41, %v1750_v42  ;;  %v3978_v55 = vld [vmem:[#allocation33_spill] sm:$0xff] }
 0x1e2   : > { %v1900_v52 = vsel %vm1779_vm0, %v1899_v30, %v1898_v10  ;;  %vm2184_vm7 = vcmp.lt.s32.totalorder %v2183_v22, 0  ;;  %vm1934_vm12 = vcmp.lt.s32.totalorder %v3978_v55, 0  ;;  %v3979_v24 = vand.u32 2147483647, %v3978_v55 }
 0x1e3   : > { %v1903_v18 = vsel %vm3715_vm6, %v3973_v45, %v1900_v52  ;;  %v2041_v2 = vsel %vm2184_vm7, 0, %v2183_v22  ;;  %v1756_v9 = vadd.f32 1.0, %v1755_v31  ;;  %v1763_v16 = vadd.f32 1.0, %v1762_v19 }
 0x1e4   : > { %v1905_v37 = vmul.f32 %v1903_v18, %v1903_v18  ;;  %v2042_v53 = vsub.s32 32, %v2041_v2  ;;  %v2046_v13 = vsub.s32 4294967266, %v2041_v2  ;;  %v2043_v17 = vshll.u32 %v2034_v50, %v2041_v2  ;;  %v3977_v50 = vld [vmem:[#allocation26_spill] sm:$0xff] }
 0x1e5   : > { %v1764_v49 = vmul.f32 %v1763_v16, %v1748_v62  ;;  %v1773_v8 = vxor.u32 2147483648, %v1756_v9  ;;  %v841_v25 = vadd.f32 %v840_v40, %v3977_v50  ;;  %vm3739_vm13 = vcmp.le.f32.partialorder %v3979_v24, 0.7853982 }
 0x1e6   : > { %v1906_v1 = vmul.f32 -0.001358992, %v1905_v37  ;;  %v1913_v54 = vmul.f32 -0.00019511016, %v1905_v37  ;;  %v2044_v6 = vshrl.u32 %v2026_v36, %v2042_v53  ;;  %v2047_v43 = vadd.s32 127, %v2046_v13  ;;  %v845_v36 = vpop.f32.mrf.mxu0 }
 0x1e7   : > { %v1770_v47 = vxor.u32 2147483648, %v1764_v49  ;;  %v1774_v62 = vsel %vm1772_vm10, %v1773_v8, %v1764_v49  ;;  %v900_v58 = vadd.f32 %v899_v0, %v841_v25  ;;  %v2056_v31 = vsub.s32 4, %v3702_v48 }
 0x1e8   : > { %v1907_v44 = vadd.f32 0.041655596, %v1906_v1  ;;  %v1914_v42 = vadd.f32 0.008332121, %v1913_v54  ;;  %v2045_v12 = vor.u32 %v2044_v6, %v2043_v17  ;;  %v2048_v63 = vshll.u32 %v2047_v43, 23  ;;  %v3982_v54 = vld [vmem:[#allocation36_spill] sm:$0xff]  ;;  %v905_v6 = vpop.f32.mrf.mxu1 }
 0x1e9   : > { %v1771_v61 = vsel %vm1769_vm9, %v1756_v9, %v1770_v47  ;;  %v950_v22 = vadd.f32 %v949_v7, %v900_v58  ;;  %vm1924_vm14 = vcmp.eq.s32.totalorder %v1922_v4, 0  ;;  %vm1927_vm15 = vcmp.eq.s32.totalorder %v1922_v4, 2 }
 0x1ea   : > { %v1908_v46 = vmul.f32 %v1907_v44, %v1905_v37  ;;  %v1915_v57 = vmul.f32 %v1914_v42, %v1905_v37  ;;  %v1775_v3 = vsel %vm1768_vm8, %v1771_v61, %v1774_v62  ;;  %v2049_v27 = vor.u32 4788187, %v2048_v63 }
 0x1eb   : > { %v1776_v23 = vsel %vm1765_vm11, nan, %v1775_v3  ;;  %v2052_v14 = vcvt.s32.f32 %v2045_v12  ;;  %vm1923_vm5 = vcmp.lt.s32.totalorder %v1922_v4, 2  ;;  %v996_v2 = vadd.f32 %v995_v15, %v950_v22  ;;  %v999_v3 = vpop.f32.mrf.mxu3 }
 0x1ec   : > { %v1909_v34 = vadd.f32 -0.4999988, %v1908_v46  ;;  %v1916_v21 = vadd.f32 -0.16666654, %v1915_v57  ;;  %v2091_v51 = vmul.f32 %v1776_v23, %v992_v33  ;;  %v2050_v59 = vand.u32 2147483647, %v2049_v27 }
 0x1ed   : > { %v2057_v33 = vsel %vm1934_vm12, %v2056_v31, %v3702_v48  ;;  %v846_v17 = vadd.f32 %v845_v36, %v3982_v54  ;;  %v953_v48 = vpop.f32.mrf.mxu2  ;;  %vm2075_vm0 = vweird.f32 %v3978_v55 }
 0x1ee   : > { %v1910_v56 = vmul.f32 %v1909_v34, %v1905_v37  ;;  %v1917_v20 = vmul.f32 %v1916_v21, %v1905_v37  ;;  %2098 = vst [vmem:[%s3535_s25 + $0x20] sm:$0xff] %v2091_v51  ;;  %v2053_v32 = vmul.f32 %v2052_v14, %v2050_v59  ;;  %v2059_v45 = vsel %vm3739_vm13, 0, %v2057_v33 }
 0x1ef   : > { %v2076_v40 = vadd.s32 3, %v2059_v45  ;;  %v906_v35 = vadd.f32 %v905_v6, %v846_v17 }
 0x1f0   : > { %v1911_v28 = vadd.f32 1.0, %v1910_v56  ;;  %v1918_v10 = vadd.f32 1.0, %v1917_v20  ;;  %v2054_v29 = vxor.u32 2147483648, %v2053_v32 }
 0x1f1   : > { %v2077_v61 = vand.u32 3, %v2076_v40  ;;  %v954_v57 = vadd.f32 %v953_v48, %v906_v35 }
 0x1f2   : > { %v1919_v41 = vmul.f32 %v1918_v10, %v1903_v18  ;;  %v1928_v30 = vxor.u32 2147483648, %v1911_v28  ;;  %v2055_v5 = vsel %vm1934_vm12, %v2054_v29, %v2053_v32 }
 0x1f3   : > { %v2058_v19 = vsel %vm3739_vm13, %v3978_v55, %v2055_v5  ;;  %vm2079_vm2 = vcmp.eq.s32.totalorder %v2077_v61, 0  ;;  %vm2082_vm3 = vcmp.eq.s32.totalorder %v2077_v61, 2  ;;  %vm2078_vm4 = vcmp.lt.s32.totalorder %v2077_v61, 2 }
 0x1f4   : > { %v1925_v26 = vxor.u32 2147483648, %v1919_v41  ;;  %v2060_v52 = vmul.f32 %v2058_v19, %v2058_v19  ;;  %v1929_v18 = vsel %vm1927_vm15, %v1928_v30, %v1919_v41  ;;  %v1000_v23 = vadd.f32 %v999_v3, %v954_v57 }
 0x1f6   : > { %v1926_v39 = vsel %vm1924_vm14, %v1911_v28, %v1925_v26  ;;  %v2061_v16 = vmul.f32 -0.001358992, %v2060_v52  ;;  %v2068_v37 = vmul.f32 -0.00019511016, %v2060_v52 }
 0x1f7   : > { %v1930_v9 = vsel %vm1923_vm5, %v1926_v39, %v1929_v18 }
 0x1f8   : > { %v1931_v53 = vsel %vm1920_vm1, nan, %v1930_v9  ;;  %v2062_v13 = vadd.f32 0.041655596, %v2061_v16  ;;  %v2069_v49 = vadd.f32 0.008332121, %v2068_v37 }
 0x1f9   : > { %v2092_v38 = vmul.f32 %v1931_v53, %v996_v2 }
 0x1fa   : > { %v2063_v8 = vmul.f32 %v2062_v13, %v2060_v52  ;;  %v2070_v1 = vmul.f32 %v2069_v49, %v2060_v52 }
 0x1fb   : > { %2099 = vst [vmem:[%s3535_s25 + $0x28] sm:$0xff] %v2092_v38 }
 0x1fc   : > { %v2064_v43 = vadd.f32 -0.4999988, %v2063_v8  ;;  %v2071_v47 = vadd.f32 -0.16666654, %v2070_v1 }
 0x1fe   : > { %v2065_v44 = vmul.f32 %v2064_v43, %v2060_v52  ;;  %v2072_v42 = vmul.f32 %v2071_v47, %v2060_v52 }
 0x200   : > { %v2066_v12 = vadd.f32 1.0, %v2065_v44  ;;  %v2073_v63 = vadd.f32 1.0, %v2072_v42 }
 0x202   : > { %v2074_v62 = vmul.f32 %v2073_v63, %v2058_v19  ;;  %v2083_v46 = vxor.u32 2147483648, %v2066_v12 }
 0x204   : > { %v2080_v50 = vxor.u32 2147483648, %v2074_v62  ;;  %v2084_v27 = vsel %vm2082_vm3, %v2083_v46, %v2074_v62 }
 0x206   : > { %v2081_v25 = vsel %vm2079_vm2, %v2066_v12, %v2080_v50 }
 0x207   : > { %v2085_v0 = vsel %vm2078_vm4, %v2081_v25, %v2084_v27 }
 0x208   : > { %v2086_v34 = vsel %vm2075_vm0, nan, %v2085_v0 }
 0x209   : > { %v2093_v21 = vmul.f32 %v2086_v34, %v1000_v23 }
 0x20b   : > { %2100 = vst [vmem:[%s3535_s25 + $0x30] sm:$0xff] %v2093_v21 }
 0x20c PF: > { %s13_s12 = sadd.s32 1, %s2222_s12  }
 0x20d   : > { %p10_p4 = scmp.ge.s32.totalorder %s13_s12, 7  }
 0x20f   :  { %12 = sbr.rel (!%p10_p4) target bundleno = 1 (0x1), region = 62 }

</bundles_post_ra>
